<compile_context>
chip_gen: v7x
topology: tpu7x:2x2x1
jax: 0.10.0
libtpu: 0.0.40
codegen_flags: <defaults>
</compile_context>

<pallas_src>
import functools

import numpy as np

import jax
import jax.numpy as jnp
from jax.experimental import pallas as pl
from jax.experimental.pallas import tpu as pltpu

_BN_EPS = 1e-5  # nn.BatchNorm3d default


def _shift_lanes(x, s, hw):
    """result[:, p] = x[:, (p + s) % hw] (cyclic).  Wrapped lanes are masked by the caller."""
    amt = (-s) % hw
    if amt == 0:
        return x
    return pltpu.roll(x, amt, axis=1)   # same semantics as jnp.roll


def _occ_fusion_kernel(xm_ref, xc_ref, xp_ref,
                       w1_ref, b1_ref, w2_ref, b2_ref,
                       w3_ref, b3_ref, w4_ref, b4_ref,
                       w5_ref, b5_ref, m_ref, o_ref,
                       *, c, cf, h, w):
    hw = h * w
    d = pl.program_id(1)
    nd = pl.num_programs(1)

    xm = xm_ref[0, 0]     # (C, HW)  depth slice d-1 (clamped at the volume boundary)
    xc = xc_ref[0, 0]     # (C, HW)  depth slice d
    xp = xp_ref[0, 0]     # (C, HW)  depth slice d+1 (clamped at the volume boundary)

    # ---- layers 1-2: pointwise 1x1x1 convs (BN folded) + ReLU.
    # The three depth slabs run as one lane-dense (C, 3*HW) matmul so layers 1-2 execute
    # once per step instead of three times.
    x3 = jnp.concatenate([xm, xc, xp], axis=1)                        # (C, 3HW)
    h1 = jnp.maximum(
        jnp.dot(w1_ref[...], x3, preferred_element_type=jnp.float32) + b1_ref[...], 0.0)
    h2 = jnp.maximum(
        jnp.dot(w2_ref[...], h1, preferred_element_type=jnp.float32) + b2_ref[...], 0.0)

    # ---- zero-pad the 3x3x3 conv along depth: halo slabs outside the volume contribute 0.
    vm = (d > 0).astype(jnp.float32)
    vp = (d < nd - 1).astype(jnp.float32)
    y_all = jnp.concatenate(
        [h2[:, :hw] * vm, h2[:, hw:2 * hw], h2[:, 2 * hw:] * vp], axis=0)   # (3C, HW)

    # ---- layer 3: 3x3x3 conv (BN folded) + ReLU, as 9 spatial (kh, kw) taps.
    acc = jnp.zeros((c, hw), dtype=jnp.float32)
    for kh in range(3):
        dh = kh - 1
        for kw in range(3):
            dw = kw - 1
            t = kh * 3 + kw
            shifted = _shift_lanes(y_all, dh * w + dw, hw)                 # (3C, HW)
            tap = jnp.dot(w3_ref[t], shifted, preferred_element_type=jnp.float32)
            if dh == 0 and dw == 0:
                acc = acc + tap
            else:
                acc = acc + tap * m_ref[t]                                 # (1, HW) mask
    h3 = jnp.maximum(acc + b3_ref[...], 0.0)

    # ---- layers 4-5: pointwise convs on the centre slab only.
    h4 = jnp.maximum(
        jnp.dot(w4_ref[...], h3, preferred_element_type=jnp.float32) + b4_ref[...], 0.0)
    h5 = jnp.maximum(
        jnp.dot(w5_ref[...], h4, preferred_element_type=jnp.float32) + b5_ref[...], 0.0)

    # ---- residual: `features` are the first cf channels of the concatenated input.
    o_ref[0, 0] = (xc[:cf, :] + h5).astype(o_ref.dtype)


def _fold_bn(conv_w, gamma, beta, mean, var, eps):
    """Fold eval-mode BatchNorm3d into the conv weight and a per-channel bias."""
    scale = gamma * jax.lax.rsqrt(var + eps)
    w_f = conv_w * scale[:, None, None, None, None]
    b_f = beta - mean * scale
    return w_f.astype(jnp.float32), b_f.reshape(-1, 1).astype(jnp.float32)


def occ_fusion_net(features, occ, params, *, eps=_BN_EPS):
    """OccFusionNet forward (inference). features: (B,Cf,D,H,W); occ: (B,Co,D,H,W)."""
    b, cf, nd, h, w = features.shape
    co = occ.shape[1]
    c = cf + co
    hw = h * w

    # Concatenate along channels and move to a lane-dense (B, D, C, H*W) layout.
    x = jnp.concatenate([features, occ], axis=1)
    x_t = jnp.transpose(x, (0, 2, 1, 3, 4)).reshape(b, nd, c, hw)

    (w1f, b1), (w2f, b2), (w3f, b3), (w4f, b4), (w5f, b5) = [
        _fold_bn(p["w"], p["gamma"], p["beta"], p["mean"], p["var"], eps) for p in params
    ]
    w1m = w1f.reshape(c, c)
    w2m = w2f.reshape(c, c)
    # (O, I, KD, KH, KW) -> tap-major (9, O, KD*I): one (C, 3C) weight per (kh, kw) tap.
    w3taps = jnp.transpose(w3f, (3, 4, 0, 2, 1)).reshape(9, c, 3 * c)
    w4m = w4f.reshape(cf, c)
    w5m = w5f.reshape(cf, cf)

    # Host-side constant border masks for the 9 spatial taps (kill wrapped / padded lanes).
    hi = np.arange(hw) // w
    wi = np.arange(hw) % w
    masks = []
    for kh in range(3):
        for kw in range(3):
            dh, dw = kh - 1, kw - 1
            m = (hi + dh >= 0) & (hi + dh < h) & (wi + dw >= 0) & (wi + dw < w)
            masks.append(m.astype(np.float32))
    tap_masks = jnp.asarray(np.stack(masks).reshape(9, 1, hw))

    x_block = (1, 1, c, hw)
    in_specs = [
        pl.BlockSpec(x_block, lambda i, j: (i, jnp.maximum(j - 1, 0), 0, 0)),
        pl.BlockSpec(x_block, lambda i, j: (i, j, 0, 0)),
        pl.BlockSpec(x_block, lambda i, j: (i, jnp.minimum(j + 1, nd - 1), 0, 0)),
        pl.BlockSpec((c, c), lambda i, j: (0, 0)),
        pl.BlockSpec((c, 1), lambda i, j: (0, 0)),
        pl.BlockSpec((c, c), lambda i, j: (0, 0)),
        pl.BlockSpec((c, 1), lambda i, j: (0, 0)),
        pl.BlockSpec((9, c, 3 * c), lambda i, j: (0, 0, 0)),
        pl.BlockSpec((c, 1), lambda i, j: (0, 0)),
        pl.BlockSpec((cf, c), lambda i, j: (0, 0)),
        pl.BlockSpec((cf, 1), lambda i, j: (0, 0)),
        pl.BlockSpec((cf, cf), lambda i, j: (0, 0)),
        pl.BlockSpec((cf, 1), lambda i, j: (0, 0)),
        pl.BlockSpec((9, 1, hw), lambda i, j: (0, 0, 0)),
    ]
    out_spec = pl.BlockSpec((1, 1, cf, hw), lambda i, j: (i, j, 0, 0))

    # VMEM budget: 3 input + 1 output block, double-buffered, plus weights/masks/temps.
    block_bytes = (3 * c + cf) * hw * 4
    const_bytes = 4 * (2 * c * c + 9 * c * 3 * c + cf * c + cf * cf + 3 * c + 2 * cf + 9 * hw)
    vmem_limit = int(min(64 * 2**20, max(32 * 2**20, 6 * block_bytes + 2 * const_bytes)))

    kernel = functools.partial(_occ_fusion_kernel, c=c, cf=cf, h=h, w=w)
    out_t = pl.pallas_call(
        kernel,
        out_shape=jax.ShapeDtypeStruct((b, nd, cf, hw), features.dtype),
        grid_spec=pltpu.PrefetchScalarGridSpec(
            num_scalar_prefetch=0,
            grid=(b, nd),
            in_specs=in_specs,
            out_specs=out_spec,
        ),
        compiler_params=pltpu.CompilerParams(
            dimension_semantics=("parallel", "parallel"),
            vmem_limit_bytes=vmem_limit,
        ),
    )(x_t, x_t, x_t, w1m, b1, w2m, b2, w3taps, b3, w4m, b4, w5m, b5, tap_masks)

    return out_t.reshape(b, nd, cf, h, w).transpose(0, 2, 1, 3, 4)


def _reference(features, occ, params, *, eps=_BN_EPS):
    """Pure-JAX/XLA reference matching the PyTorch forward (eval-mode BN)."""
    x = jnp.concatenate([features, occ], axis=1)
    for p in params:
        wgt = p["w"]
        pads = [(wgt.shape[2] // 2,) * 2, (wgt.shape[3] // 2,) * 2, (wgt.shape[4] // 2,) * 2]
        x = jax.lax.conv_general_dilated(
            x, wgt, window_strides=(1, 1, 1), padding=pads,
            dimension_numbers=("NCDHW", "OIDHW", "NCDHW"))
        scale = p["gamma"] * jax.lax.rsqrt(p["var"] + eps)
        shift = p["beta"] - p["mean"] * scale
        x = x * scale[None, :, None, None, None] + shift[None, :, None, None, None]
        x = jnp.maximum(x, 0.0)
    return features + x


if __name__ == "__main__":
    key = jax.random.PRNGKey(0)
    B, CF, CO, D, H, W = 2, 12, 4, 4, 16, 16     # C = CF + CO = 16 keeps sublane tiles full
    C = CF + CO

    keys = jax.random.split(key, 32)
    features = jax.random.normal(keys[0], (B, CF, D, H, W), dtype=jnp.float32)
    occ = jax.random.normal(keys[1], (B, CO, D, H, W), dtype=jnp.float32)

    layer_shapes = [
        (C, C, 1, 1, 1),
        (C, C, 1, 1, 1),
        (C, C, 3, 3, 3),
        (CF, C, 1, 1, 1),
        (CF, CF, 1, 1, 1),
    ]
    params = []
    ki = 2
    for (o, i, kd, kh, kw) in layer_shapes:
        fan_in = i * kd * kh * kw
        params.append(dict(
            w=jax.random.normal(keys[ki], (o, i, kd, kh, kw), jnp.float32)
              * (2.0 / fan_in) ** 0.5,
            gamma=1.0 + 0.1 * jax.random.normal(keys[ki + 1], (o,), jnp.float32),
            beta=0.1 * jax.random.normal(keys[ki + 2], (o,), jnp.float32),
            mean=0.1 * jax.random.normal(keys[ki + 3], (o,), jnp.float32),
            var=jnp.abs(1.0 + 0.1 * jax.random.normal(keys[ki + 4], (o,), jnp.float32)),
        ))
        ki += 5

    out = occ_fusion_net(features, occ, params)
    jax.block_until_ready(out)

    ref = _reference(features, occ, params)
    assert out.shape == features.shape, out.shape
    max_err = float(jnp.max(jnp.abs(out - ref)))
    assert jnp.allclose(out, ref, atol=2e-2, rtol=2e-2), (
        f"mismatch vs reference (max abs err {max_err})")

    print("KERNEL_OK")
</pallas_src>

<mosaic_0001>
module attributes {stable_mosaic.version = 11 : i64} {
  func.func @_occ_fusion_kernel(%arg0: i32, %arg1: i32, %arg2: memref<1x1x16x256xf32, #tpu.memory_space<vmem>>, %arg3: memref<1x1x16x256xf32, #tpu.memory_space<vmem>>, %arg4: memref<1x1x16x256xf32, #tpu.memory_space<vmem>>, %arg5: memref<16x16xf32, #tpu.memory_space<vmem>>, %arg6: memref<16x1xf32, #tpu.memory_space<vmem>>, %arg7: memref<16x16xf32, #tpu.memory_space<vmem>>, %arg8: memref<16x1xf32, #tpu.memory_space<vmem>>, %arg9: memref<9x16x48xf32, #tpu.memory_space<vmem>>, %arg10: memref<16x1xf32, #tpu.memory_space<vmem>>, %arg11: memref<12x16xf32, #tpu.memory_space<vmem>>, %arg12: memref<12x1xf32, #tpu.memory_space<vmem>>, %arg13: memref<12x12xf32, #tpu.memory_space<vmem>>, %arg14: memref<12x1xf32, #tpu.memory_space<vmem>>, %arg15: memref<9x1x256xf32, #tpu.memory_space<vmem>>, %arg16: memref<1x1x12x256xf32, #tpu.memory_space<vmem>>) attributes {dimension_semantics = [#tpu.dimension_semantics<parallel>, #tpu.dimension_semantics<parallel>], iteration_bounds = array<i64: 2, 4>, scalar_prefetch = 0 : i64, scratch_operands = 0 : i64, tpu.core_type = #tpu.core_type<tc>, window_params = [{transform_indices = @transform_0, window_bounds = array<i64: 1, 1, 16, 256>}, {transform_indices = @transform_1, window_bounds = array<i64: 1, 1, 16, 256>}, {transform_indices = @transform_2, window_bounds = array<i64: 1, 1, 16, 256>}, {pipeline_mode = #tpu.pipeline_mode<synchronous>, transform_indices = @transform_3, window_bounds = array<i64: 16, 16>}, {pipeline_mode = #tpu.pipeline_mode<synchronous>, transform_indices = @transform_4, window_bounds = array<i64: 16, 1>}, {pipeline_mode = #tpu.pipeline_mode<synchronous>, transform_indices = @transform_5, window_bounds = array<i64: 16, 16>}, {pipeline_mode = #tpu.pipeline_mode<synchronous>, transform_indices = @transform_6, window_bounds = array<i64: 16, 1>}, {pipeline_mode = #tpu.pipeline_mode<synchronous>, transform_indices = @transform_7, window_bounds = array<i64: 9, 16, 48>}, {pipeline_mode = #tpu.pipeline_mode<synchronous>, transform_indices = @transform_8, window_bounds = array<i64: 16, 1>}, {pipeline_mode = #tpu.pipeline_mode<synchronous>, transform_indices = @transform_9, window_bounds = array<i64: 12, 16>}, {pipeline_mode = #tpu.pipeline_mode<synchronous>, transform_indices = @transform_10, window_bounds = array<i64: 12, 1>}, {pipeline_mode = #tpu.pipeline_mode<synchronous>, transform_indices = @transform_11, window_bounds = array<i64: 12, 12>}, {pipeline_mode = #tpu.pipeline_mode<synchronous>, transform_indices = @transform_12, window_bounds = array<i64: 12, 1>}, {pipeline_mode = #tpu.pipeline_mode<synchronous>, transform_indices = @transform_13, window_bounds = array<i64: 9, 1, 256>}, {transform_indices = @transform_14, window_bounds = array<i64: 1, 1, 12, 256>}]} {
    %c0 = arith.constant 0 : index
    %c0_0 = arith.constant 0 : index
    %c0_1 = arith.constant 0 : index
    %c0_2 = arith.constant 0 : index
    %0 = vector.load %arg2[%c0, %c0_0, %c0_1, %c0_2] : memref<1x1x16x256xf32, #tpu.memory_space<vmem>>, vector<1x1x16x256xf32>
    %1 = vector.shape_cast %0 : vector<1x1x16x256xf32> to vector<16x256xf32>
    %c0_3 = arith.constant 0 : index
    %c0_4 = arith.constant 0 : index
    %c0_5 = arith.constant 0 : index
    %c0_6 = arith.constant 0 : index
    %2 = vector.load %arg3[%c0_3, %c0_4, %c0_5, %c0_6] : memref<1x1x16x256xf32, #tpu.memory_space<vmem>>, vector<1x1x16x256xf32>
    %3 = vector.shape_cast %2 : vector<1x1x16x256xf32> to vector<16x256xf32>
    %c0_7 = arith.constant 0 : index
    %c0_8 = arith.constant 0 : index
    %c0_9 = arith.constant 0 : index
    %c0_10 = arith.constant 0 : index
    %4 = vector.load %arg4[%c0_7, %c0_8, %c0_9, %c0_10] : memref<1x1x16x256xf32, #tpu.memory_space<vmem>>, vector<1x1x16x256xf32>
    %5 = vector.shape_cast %4 : vector<1x1x16x256xf32> to vector<16x256xf32>
    %6 = tpu.concatenate %1, %3, %5 in 1 : vector<16x256xf32>, vector<16x256xf32>, vector<16x256xf32> -> vector<16x768xf32>
    %c0_11 = arith.constant 0 : index
    %c0_12 = arith.constant 0 : index
    %7 = vector.load %arg5[%c0_11, %c0_12] : memref<16x16xf32, #tpu.memory_space<vmem>>, vector<16x16xf32>
    %cst = arith.constant dense<0.000000e+00> : vector<16x768xf32>
    %8 = tpu.matmul %7, %6, %cst {dimension_numbers = #tpu.dot_dimension_numbers<[1], [0], [0], [1], [0, 0, 1, 1], [], []>} : vector<16x16xf32>, vector<16x768xf32>, vector<16x768xf32> -> vector<16x768xf32>
    %c0_13 = arith.constant 0 : index
    %c0_14 = arith.constant 0 : index
    %9 = vector.load %arg6[%c0_13, %c0_14] : memref<16x1xf32, #tpu.memory_space<vmem>>, vector<16x1xf32>
    %10 = vector.broadcast %9 : vector<16x1xf32> to vector<16x768xf32>
    %11 = arith.addf %8, %10 : vector<16x768xf32>
    %cst_15 = arith.constant 0.000000e+00 : f32
    %12 = vector.broadcast %cst_15 : f32 to vector<16x768xf32>
    %13 = arith.maximumf %11, %12 : vector<16x768xf32>
    %c0_16 = arith.constant 0 : index
    %c0_17 = arith.constant 0 : index
    %14 = vector.load %arg7[%c0_16, %c0_17] : memref<16x16xf32, #tpu.memory_space<vmem>>, vector<16x16xf32>
    %cst_18 = arith.constant dense<0.000000e+00> : vector<16x768xf32>
    %15 = tpu.matmul %14, %13, %cst_18 {dimension_numbers = #tpu.dot_dimension_numbers<[1], [0], [0], [1], [0, 0, 1, 1], [], []>} : vector<16x16xf32>, vector<16x768xf32>, vector<16x768xf32> -> vector<16x768xf32>
    %c0_19 = arith.constant 0 : index
    %c0_20 = arith.constant 0 : index
    %16 = vector.load %arg8[%c0_19, %c0_20] : memref<16x1xf32, #tpu.memory_space<vmem>>, vector<16x1xf32>
    %17 = vector.broadcast %16 : vector<16x1xf32> to vector<16x768xf32>
    %18 = arith.addf %15, %17 : vector<16x768xf32>
    %cst_21 = arith.constant 0.000000e+00 : f32
    %19 = vector.broadcast %cst_21 : f32 to vector<16x768xf32>
    %20 = arith.maximumf %18, %19 : vector<16x768xf32>
    %c0_i32 = arith.constant 0 : i32
    %21 = arith.cmpi sgt, %arg1, %c0_i32 : i32
    %22 = arith.extui %21 : i1 to i32
    %23 = arith.sitofp %22 : i32 to f32
    %c3_i32 = arith.constant 3 : i32
    %24 = arith.cmpi slt, %arg1, %c3_i32 : i32
    %25 = arith.extui %24 : i1 to i32
    %26 = arith.sitofp %25 : i32 to f32
    %27 = vector.extract_strided_slice %20 {offsets = [0, 0], sizes = [16, 256], strides = [1, 1]} : vector<16x768xf32> to vector<16x256xf32>
    %28 = vector.broadcast %23 : f32 to vector<16x256xf32>
    %29 = arith.mulf %27, %28 : vector<16x256xf32>
    %30 = vector.extract_strided_slice %20 {offsets = [0, 256], sizes = [16, 256], strides = [1, 1]} : vector<16x768xf32> to vector<16x256xf32>
    %31 = vector.extract_strided_slice %20 {offsets = [0, 512], sizes = [16, 256], strides = [1, 1]} : vector<16x768xf32> to vector<16x256xf32>
    %32 = vector.broadcast %26 : f32 to vector<16x256xf32>
    %33 = arith.mulf %31, %32 : vector<16x256xf32>
    %34 = tpu.concatenate %29, %30, %33 in 0 : vector<16x256xf32>, vector<16x256xf32>, vector<16x256xf32> -> vector<48x256xf32>
    %cst_22 = arith.constant 0.000000e+00 : f32
    %35 = vector.broadcast %cst_22 : f32 to vector<16x256xf32>
    %c17_i32 = arith.constant 17 : i32
    %36 = tpu.dynamic_rotate %34 by %c17_i32 dim 1 : vector<48x256xf32>, i32 -> vector<48x256xf32>
    %c0_23 = arith.constant 0 : index
    %c0_24 = arith.constant 0 : index
    %c0_25 = arith.constant 0 : index
    %37 = vector.load %arg9[%c0_23, %c0_24, %c0_25] : memref<9x16x48xf32, #tpu.memory_space<vmem>>, vector<1x16x48xf32>
    %38 = vector.shape_cast %37 : vector<1x16x48xf32> to vector<16x48xf32>
    %cst_26 = arith.constant dense<0.000000e+00> : vector<16x256xf32>
    %39 = tpu.matmul %38, %36, %cst_26 {dimension_numbers = #tpu.dot_dimension_numbers<[1], [0], [0], [1], [0, 0, 1, 1], [], []>} : vector<16x48xf32>, vector<48x256xf32>, vector<16x256xf32> -> vector<16x256xf32>
    %c0_27 = arith.constant 0 : index
    %c0_28 = arith.constant 0 : index
    %c0_29 = arith.constant 0 : index
    %40 = vector.load %arg15[%c0_27, %c0_28, %c0_29] : memref<9x1x256xf32, #tpu.memory_space<vmem>>, vector<1x1x256xf32>
    %41 = vector.shape_cast %40 : vector<1x1x256xf32> to vector<1x256xf32>
    %42 = vector.broadcast %41 : vector<1x256xf32> to vector<16x256xf32>
    %43 = arith.mulf %39, %42 : vector<16x256xf32>
    %44 = arith.addf %35, %43 : vector<16x256xf32>
    %c16_i32 = arith.constant 16 : i32
    %45 = tpu.dynamic_rotate %34 by %c16_i32 dim 1 : vector<48x256xf32>, i32 -> vector<48x256xf32>
    %c1 = arith.constant 1 : index
    %c0_30 = arith.constant 0 : index
    %c0_31 = arith.constant 0 : index
    %46 = vector.load %arg9[%c1, %c0_30, %c0_31] : memref<9x16x48xf32, #tpu.memory_space<vmem>>, vector<1x16x48xf32>
    %47 = vector.shape_cast %46 : vector<1x16x48xf32> to vector<16x48xf32>
    %cst_32 = arith.constant dense<0.000000e+00> : vector<16x256xf32>
    %48 = tpu.matmul %47, %45, %cst_32 {dimension_numbers = #tpu.dot_dimension_numbers<[1], [0], [0], [1], [0, 0, 1, 1], [], []>} : vector<16x48xf32>, vector<48x256xf32>, vector<16x256xf32> -> vector<16x256xf32>
    %c1_33 = arith.constant 1 : index
    %c0_34 = arith.constant 0 : index
    %c0_35 = arith.constant 0 : index
    %49 = vector.load %arg15[%c1_33, %c0_34, %c0_35] : memref<9x1x256xf32, #tpu.memory_space<vmem>>, vector<1x1x256xf32>
    %50 = vector.shape_cast %49 : vector<1x1x256xf32> to vector<1x256xf32>
    %51 = vector.broadcast %50 : vector<1x256xf32> to vector<16x256xf32>
    %52 = arith.mulf %48, %51 : vector<16x256xf32>
    %53 = arith.addf %44, %52 : vector<16x256xf32>
    %c15_i32 = arith.constant 15 : i32
    %54 = tpu.dynamic_rotate %34 by %c15_i32 dim 1 : vector<48x256xf32>, i32 -> vector<48x256xf32>
    %c2 = arith.constant 2 : index
    %c0_36 = arith.constant 0 : index
    %c0_37 = arith.constant 0 : index
    %55 = vector.load %arg9[%c2, %c0_36, %c0_37] : memref<9x16x48xf32, #tpu.memory_space<vmem>>, vector<1x16x48xf32>
    %56 = vector.shape_cast %55 : vector<1x16x48xf32> to vector<16x48xf32>
    %cst_38 = arith.constant dense<0.000000e+00> : vector<16x256xf32>
    %57 = tpu.matmul %56, %54, %cst_38 {dimension_numbers = #tpu.dot_dimension_numbers<[1], [0], [0], [1], [0, 0, 1, 1], [], []>} : vector<16x48xf32>, vector<48x256xf32>, vector<16x256xf32> -> vector<16x256xf32>
    %c2_39 = arith.constant 2 : index
    %c0_40 = arith.constant 0 : index
    %c0_41 = arith.constant 0 : index
    %58 = vector.load %arg15[%c2_39, %c0_40, %c0_41] : memref<9x1x256xf32, #tpu.memory_space<vmem>>, vector<1x1x256xf32>
    %59 = vector.shape_cast %58 : vector<1x1x256xf32> to vector<1x256xf32>
    %60 = vector.broadcast %59 : vector<1x256xf32> to vector<16x256xf32>
    %61 = arith.mulf %57, %60 : vector<16x256xf32>
    %62 = arith.addf %53, %61 : vector<16x256xf32>
    %c1_i32 = arith.constant 1 : i32
    %63 = tpu.dynamic_rotate %34 by %c1_i32 dim 1 : vector<48x256xf32>, i32 -> vector<48x256xf32>
    %c3 = arith.constant 3 : index
    %c0_42 = arith.constant 0 : index
    %c0_43 = arith.constant 0 : index
    %64 = vector.load %arg9[%c3, %c0_42, %c0_43] : memref<9x16x48xf32, #tpu.memory_space<vmem>>, vector<1x16x48xf32>
    %65 = vector.shape_cast %64 : vector<1x16x48xf32> to vector<16x48xf32>
    %cst_44 = arith.constant dense<0.000000e+00> : vector<16x256xf32>
    %66 = tpu.matmul %65, %63, %cst_44 {dimension_numbers = #tpu.dot_dimension_numbers<[1], [0], [0], [1], [0, 0, 1, 1], [], []>} : vector<16x48xf32>, vector<48x256xf32>, vector<16x256xf32> -> vector<16x256xf32>
    %c3_45 = arith.constant 3 : index
    %c0_46 = arith.constant 0 : index
    %c0_47 = arith.constant 0 : index
    %67 = vector.load %arg15[%c3_45, %c0_46, %c0_47] : memref<9x1x256xf32, #tpu.memory_space<vmem>>, vector<1x1x256xf32>
    %68 = vector.shape_cast %67 : vector<1x1x256xf32> to vector<1x256xf32>
    %69 = vector.broadcast %68 : vector<1x256xf32> to vector<16x256xf32>
    %70 = arith.mulf %66, %69 : vector<16x256xf32>
    %71 = arith.addf %62, %70 : vector<16x256xf32>
    %c4 = arith.constant 4 : index
    %c0_48 = arith.constant 0 : index
    %c0_49 = arith.constant 0 : index
    %72 = vector.load %arg9[%c4, %c0_48, %c0_49] : memref<9x16x48xf32, #tpu.memory_space<vmem>>, vector<1x16x48xf32>
    %73 = vector.shape_cast %72 : vector<1x16x48xf32> to vector<16x48xf32>
    %cst_50 = arith.constant dense<0.000000e+00> : vector<16x256xf32>
    %74 = tpu.matmul %73, %34, %cst_50 {dimension_numbers = #tpu.dot_dimension_numbers<[1], [0], [0], [1], [0, 0, 1, 1], [], []>} : vector<16x48xf32>, vector<48x256xf32>, vector<16x256xf32> -> vector<16x256xf32>
    %75 = arith.addf %71, %74 : vector<16x256xf32>
    %c255_i32 = arith.constant 255 : i32
    %76 = tpu.dynamic_rotate %34 by %c255_i32 dim 1 : vector<48x256xf32>, i32 -> vector<48x256xf32>
    %c5 = arith.constant 5 : index
    %c0_51 = arith.constant 0 : index
    %c0_52 = arith.constant 0 : index
    %77 = vector.load %arg9[%c5, %c0_51, %c0_52] : memref<9x16x48xf32, #tpu.memory_space<vmem>>, vector<1x16x48xf32>
    %78 = vector.shape_cast %77 : vector<1x16x48xf32> to vector<16x48xf32>
    %cst_53 = arith.constant dense<0.000000e+00> : vector<16x256xf32>
    %79 = tpu.matmul %78, %76, %cst_53 {dimension_numbers = #tpu.dot_dimension_numbers<[1], [0], [0], [1], [0, 0, 1, 1], [], []>} : vector<16x48xf32>, vector<48x256xf32>, vector<16x256xf32> -> vector<16x256xf32>
    %c5_54 = arith.constant 5 : index
    %c0_55 = arith.constant 0 : index
    %c0_56 = arith.constant 0 : index
    %80 = vector.load %arg15[%c5_54, %c0_55, %c0_56] : memref<9x1x256xf32, #tpu.memory_space<vmem>>, vector<1x1x256xf32>
    %81 = vector.shape_cast %80 : vector<1x1x256xf32> to vector<1x256xf32>
    %82 = vector.broadcast %81 : vector<1x256xf32> to vector<16x256xf32>
    %83 = arith.mulf %79, %82 : vector<16x256xf32>
    %84 = arith.addf %75, %83 : vector<16x256xf32>
    %c241_i32 = arith.constant 241 : i32
    %85 = tpu.dynamic_rotate %34 by %c241_i32 dim 1 : vector<48x256xf32>, i32 -> vector<48x256xf32>
    %c6 = arith.constant 6 : index
    %c0_57 = arith.constant 0 : index
    %c0_58 = arith.constant 0 : index
    %86 = vector.load %arg9[%c6, %c0_57, %c0_58] : memref<9x16x48xf32, #tpu.memory_space<vmem>>, vector<1x16x48xf32>
    %87 = vector.shape_cast %86 : vector<1x16x48xf32> to vector<16x48xf32>
    %cst_59 = arith.constant dense<0.000000e+00> : vector<16x256xf32>
    %88 = tpu.matmul %87, %85, %cst_59 {dimension_numbers = #tpu.dot_dimension_numbers<[1], [0], [0], [1], [0, 0, 1, 1], [], []>} : vector<16x48xf32>, vector<48x256xf32>, vector<16x256xf32> -> vector<16x256xf32>
    %c6_60 = arith.constant 6 : index
    %c0_61 = arith.constant 0 : index
    %c0_62 = arith.constant 0 : index
    %89 = vector.load %arg15[%c6_60, %c0_61, %c0_62] : memref<9x1x256xf32, #tpu.memory_space<vmem>>, vector<1x1x256xf32>
    %90 = vector.shape_cast %89 : vector<1x1x256xf32> to vector<1x256xf32>
    %91 = vector.broadcast %90 : vector<1x256xf32> to vector<16x256xf32>
    %92 = arith.mulf %88, %91 : vector<16x256xf32>
    %93 = arith.addf %84, %92 : vector<16x256xf32>
    %c240_i32 = arith.constant 240 : i32
    %94 = tpu.dynamic_rotate %34 by %c240_i32 dim 1 : vector<48x256xf32>, i32 -> vector<48x256xf32>
    %c7 = arith.constant 7 : index
    %c0_63 = arith.constant 0 : index
    %c0_64 = arith.constant 0 : index
    %95 = vector.load %arg9[%c7, %c0_63, %c0_64] : memref<9x16x48xf32, #tpu.memory_space<vmem>>, vector<1x16x48xf32>
    %96 = vector.shape_cast %95 : vector<1x16x48xf32> to vector<16x48xf32>
    %cst_65 = arith.constant dense<0.000000e+00> : vector<16x256xf32>
    %97 = tpu.matmul %96, %94, %cst_65 {dimension_numbers = #tpu.dot_dimension_numbers<[1], [0], [0], [1], [0, 0, 1, 1], [], []>} : vector<16x48xf32>, vector<48x256xf32>, vector<16x256xf32> -> vector<16x256xf32>
    %c7_66 = arith.constant 7 : index
    %c0_67 = arith.constant 0 : index
    %c0_68 = arith.constant 0 : index
    %98 = vector.load %arg15[%c7_66, %c0_67, %c0_68] : memref<9x1x256xf32, #tpu.memory_space<vmem>>, vector<1x1x256xf32>
    %99 = vector.shape_cast %98 : vector<1x1x256xf32> to vector<1x256xf32>
    %100 = vector.broadcast %99 : vector<1x256xf32> to vector<16x256xf32>
    %101 = arith.mulf %97, %100 : vector<16x256xf32>
    %102 = arith.addf %93, %101 : vector<16x256xf32>
    %c239_i32 = arith.constant 239 : i32
    %103 = tpu.dynamic_rotate %34 by %c239_i32 dim 1 : vector<48x256xf32>, i32 -> vector<48x256xf32>
    %c8 = arith.constant 8 : index
    %c0_69 = arith.constant 0 : index
    %c0_70 = arith.constant 0 : index
    %104 = vector.load %arg9[%c8, %c0_69, %c0_70] : memref<9x16x48xf32, #tpu.memory_space<vmem>>, vector<1x16x48xf32>
    %105 = vector.shape_cast %104 : vector<1x16x48xf32> to vector<16x48xf32>
    %cst_71 = arith.constant dense<0.000000e+00> : vector<16x256xf32>
    %106 = tpu.matmul %105, %103, %cst_71 {dimension_numbers = #tpu.dot_dimension_numbers<[1], [0], [0], [1], [0, 0, 1, 1], [], []>} : vector<16x48xf32>, vector<48x256xf32>, vector<16x256xf32> -> vector<16x256xf32>
    %c8_72 = arith.constant 8 : index
    %c0_73 = arith.constant 0 : index
    %c0_74 = arith.constant 0 : index
    %107 = vector.load %arg15[%c8_72, %c0_73, %c0_74] : memref<9x1x256xf32, #tpu.memory_space<vmem>>, vector<1x1x256xf32>
    %108 = vector.shape_cast %107 : vector<1x1x256xf32> to vector<1x256xf32>
    %109 = vector.broadcast %108 : vector<1x256xf32> to vector<16x256xf32>
    %110 = arith.mulf %106, %109 : vector<16x256xf32>
    %111 = arith.addf %102, %110 : vector<16x256xf32>
    %c0_75 = arith.constant 0 : index
    %c0_76 = arith.constant 0 : index
    %112 = vector.load %arg10[%c0_75, %c0_76] : memref<16x1xf32, #tpu.memory_space<vmem>>, vector<16x1xf32>
    %113 = vector.broadcast %112 : vector<16x1xf32> to vector<16x256xf32>
    %114 = arith.addf %111, %113 : vector<16x256xf32>
    %cst_77 = arith.constant 0.000000e+00 : f32
    %115 = vector.broadcast %cst_77 : f32 to vector<16x256xf32>
    %116 = arith.maximumf %114, %115 : vector<16x256xf32>
    %c0_78 = arith.constant 0 : index
    %c0_79 = arith.constant 0 : index
    %117 = vector.load %arg11[%c0_78, %c0_79] : memref<12x16xf32, #tpu.memory_space<vmem>>, vector<12x16xf32>
    %cst_80 = arith.constant dense<0.000000e+00> : vector<12x256xf32>
    %118 = tpu.matmul %117, %116, %cst_80 {dimension_numbers = #tpu.dot_dimension_numbers<[1], [0], [0], [1], [0, 0, 1, 1], [], []>} : vector<12x16xf32>, vector<16x256xf32>, vector<12x256xf32> -> vector<12x256xf32>
    %c0_81 = arith.constant 0 : index
    %c0_82 = arith.constant 0 : index
    %119 = vector.load %arg12[%c0_81, %c0_82] : memref<12x1xf32, #tpu.memory_space<vmem>>, vector<12x1xf32>
    %120 = vector.broadcast %119 : vector<12x1xf32> to vector<12x256xf32>
    %121 = arith.addf %118, %120 : vector<12x256xf32>
    %cst_83 = arith.constant 0.000000e+00 : f32
    %122 = vector.broadcast %cst_83 : f32 to vector<12x256xf32>
    %123 = arith.maximumf %121, %122 : vector<12x256xf32>
    %c0_84 = arith.constant 0 : index
    %c0_85 = arith.constant 0 : index
    %124 = vector.load %arg13[%c0_84, %c0_85] : memref<12x12xf32, #tpu.memory_space<vmem>>, vector<12x12xf32>
    %cst_86 = arith.constant dense<0.000000e+00> : vector<12x256xf32>
    %125 = tpu.matmul %124, %123, %cst_86 {dimension_numbers = #tpu.dot_dimension_numbers<[1], [0], [0], [1], [0, 0, 1, 1], [], []>} : vector<12x12xf32>, vector<12x256xf32>, vector<12x256xf32> -> vector<12x256xf32>
    %c0_87 = arith.constant 0 : index
    %c0_88 = arith.constant 0 : index
    %126 = vector.load %arg14[%c0_87, %c0_88] : memref<12x1xf32, #tpu.memory_space<vmem>>, vector<12x1xf32>
    %127 = vector.broadcast %126 : vector<12x1xf32> to vector<12x256xf32>
    %128 = arith.addf %125, %127 : vector<12x256xf32>
    %cst_89 = arith.constant 0.000000e+00 : f32
    %129 = vector.broadcast %cst_89 : f32 to vector<12x256xf32>
    %130 = arith.maximumf %128, %129 : vector<12x256xf32>
    %131 = vector.extract_strided_slice %3 {offsets = [0, 0], sizes = [12, 256], strides = [1, 1]} : vector<16x256xf32> to vector<12x256xf32>
    %132 = arith.addf %131, %130 : vector<12x256xf32>
    %c0_90 = arith.constant 0 : index
    %c0_91 = arith.constant 0 : index
    %c0_92 = arith.constant 0 : index
    %c0_93 = arith.constant 0 : index
    %133 = vector.load %arg16[%c0_90, %c0_91, %c0_92, %c0_93] : memref<1x1x12x256xf32, #tpu.memory_space<vmem>>, vector<1x1x12x256xf32>
    %134 = vector.shape_cast %133 : vector<1x1x12x256xf32> to vector<12x256xf32>
    %135 = vector.shape_cast %132 : vector<12x256xf32> to vector<1x1x12x256xf32>
    tpu.vector_store %arg16[%c0_90, %c0_91, %c0_92, %c0_93], %135 {strides = array<i32>} : memref<1x1x12x256xf32, #tpu.memory_space<vmem>>, vector<1x1x12x256xf32>,
    return
  }
  func.func @transform_0(%arg0: i32, %arg1: i32) -> (i32, i32, i32, i32) {
    %c1_i32 = arith.constant 1 : i32
    %0 = arith.subi %arg1, %c1_i32 : i32
    %c0_i32 = arith.constant 0 : i32
    %1 = arith.maxsi %0, %c0_i32 : i32
    %c0_i32_0 = arith.constant 0 : i32
    %c0_i32_1 = arith.constant 0 : i32
    %c0_i32_2 = arith.constant 0 : i32
    return %arg0, %1, %c0_i32_0, %c0_i32_1 : i32, i32, i32, i32
  }
  func.func @transform_1(%arg0: i32, %arg1: i32) -> (i32, i32, i32, i32) {
    %c0_i32 = arith.constant 0 : i32
    %c0_i32_0 = arith.constant 0 : i32
    %c0_i32_1 = arith.constant 0 : i32
    return %arg0, %arg1, %c0_i32, %c0_i32_0 : i32, i32, i32, i32
  }
  func.func @transform_2(%arg0: i32, %arg1: i32) -> (i32, i32, i32, i32) {
    %c1_i32 = arith.constant 1 : i32
    %0 = arith.addi %arg1, %c1_i32 : i32
    %c3_i32 = arith.constant 3 : i32
    %1 = arith.minsi %0, %c3_i32 : i32
    %c0_i32 = arith.constant 0 : i32
    %c0_i32_0 = arith.constant 0 : i32
    %c0_i32_1 = arith.constant 0 : i32
    return %arg0, %1, %c0_i32, %c0_i32_0 : i32, i32, i32, i32
  }
  func.func @transform_3(%arg0: i32, %arg1: i32) -> (i32, i32) {
    %c0_i32 = arith.constant 0 : i32
    %c0_i32_0 = arith.constant 0 : i32
    %c0_i32_1 = arith.constant 0 : i32
    return %c0_i32, %c0_i32_0 : i32, i32
  }
  func.func @transform_4(%arg0: i32, %arg1: i32) -> (i32, i32) {
    %c0_i32 = arith.constant 0 : i32
    %c0_i32_0 = arith.constant 0 : i32
    %c0_i32_1 = arith.constant 0 : i32
    return %c0_i32, %c0_i32_0 : i32, i32
  }
  func.func @transform_5(%arg0: i32, %arg1: i32) -> (i32, i32) {
    %c0_i32 = arith.constant 0 : i32
    %c0_i32_0 = arith.constant 0 : i32
    %c0_i32_1 = arith.constant 0 : i32
    return %c0_i32, %c0_i32_0 : i32, i32
  }
  func.func @transform_6(%arg0: i32, %arg1: i32) -> (i32, i32) {
    %c0_i32 = arith.constant 0 : i32
    %c0_i32_0 = arith.constant 0 : i32
    %c0_i32_1 = arith.constant 0 : i32
    return %c0_i32, %c0_i32_0 : i32, i32
  }
  func.func @transform_7(%arg0: i32, %arg1: i32) -> (i32, i32, i32) {
    %c0_i32 = arith.constant 0 : i32
    %c0_i32_0 = arith.constant 0 : i32
    %c0_i32_1 = arith.constant 0 : i32
    %c0_i32_2 = arith.constant 0 : i32
    return %c0_i32, %c0_i32_0, %c0_i32_1 : i32, i32, i32
  }
  func.func @transform_8(%arg0: i32, %arg1: i32) -> (i32, i32) {
    %c0_i32 = arith.constant 0 : i32
    %c0_i32_0 = arith.constant 0 : i32
    %c0_i32_1 = arith.constant 0 : i32
    return %c0_i32, %c0_i32_0 : i32, i32
  }
  func.func @transform_9(%arg0: i32, %arg1: i32) -> (i32, i32) {
    %c0_i32 = arith.constant 0 : i32
    %c0_i32_0 = arith.constant 0 : i32
    %c0_i32_1 = arith.constant 0 : i32
    return %c0_i32, %c0_i32_0 : i32, i32
  }
  func.func @transform_10(%arg0: i32, %arg1: i32) -> (i32, i32) {
    %c0_i32 = arith.constant 0 : i32
    %c0_i32_0 = arith.constant 0 : i32
    %c0_i32_1 = arith.constant 0 : i32
    return %c0_i32, %c0_i32_0 : i32, i32
  }
  func.func @transform_11(%arg0: i32, %arg1: i32) -> (i32, i32) {
    %c0_i32 = arith.constant 0 : i32
    %c0_i32_0 = arith.constant 0 : i32
    %c0_i32_1 = arith.constant 0 : i32
    return %c0_i32, %c0_i32_0 : i32, i32
  }
  func.func @transform_12(%arg0: i32, %arg1: i32) -> (i32, i32) {
    %c0_i32 = arith.constant 0 : i32
    %c0_i32_0 = arith.constant 0 : i32
    %c0_i32_1 = arith.constant 0 : i32
    return %c0_i32, %c0_i32_0 : i32, i32
  }
  func.func @transform_13(%arg0: i32, %arg1: i32) -> (i32, i32, i32) {
    %c0_i32 = arith.constant 0 : i32
    %c0_i32_0 = arith.constant 0 : i32
    %c0_i32_1 = arith.constant 0 : i32
    %c0_i32_2 = arith.constant 0 : i32
    return %c0_i32, %c0_i32_0, %c0_i32_1 : i32, i32, i32
  }
  func.func @transform_14(%arg0: i32, %arg1: i32) -> (i32, i32, i32, i32) {
    %c0_i32 = arith.constant 0 : i32
    %c0_i32_0 = arith.constant 0 : i32
    %c0_i32_1 = arith.constant 0 : i32
    return %arg0, %arg1, %c0_i32, %c0_i32_0 : i32, i32, i32, i32
  }
}

</mosaic_0001>

<bundles_post_ra>
// kernel: tpu_custom_call.1
= control target key start
LH: loop header
LB: loop body
LE: loop exit
PB: predicated region body
PF: predicated region fallthrough
CT: control target
= control target key end

     0   :  { %s4852_s0 = inlined_call_operand.hbm [shape: f32[2,4,16,256], index: 0, kind: input, shape index: {}]   ;;  %s4853_s1 = inlined_call_operand.hbm [shape: f32[2,4,16,256], index: 1, kind: input, shape index: {}]   ;;  %s4854_s2 = inlined_call_operand.hbm [shape: f32[2,4,16,256], index: 2, kind: input, shape index: {}]   ;;  %s4855_s3 = inlined_call_operand.vmem [shape: f32[16,16], index: 3, kind: input, shape index: {}]   ;;  %s4856_s4 = inlined_call_operand.vmem [shape: f32[16,1], index: 4, kind: input, shape index: {}]   ;;  %s4857_s5 = inlined_call_operand.vmem [shape: f32[16,16], index: 5, kind: input, shape index: {}]   ;;  %s4858_s6 = inlined_call_operand.vmem [shape: f32[16,1], index: 6, kind: input, shape index: {}]   ;;  %s4859_s7 = inlined_call_operand.hbm [shape: f32[9,16,48], index: 7, kind: input, shape index: {}]   ;;  %s4860_s8 = inlined_call_operand.vmem [shape: f32[16,1], index: 8, kind: input, shape index: {}]   ;;  %s4861_s9 = inlined_call_operand.vmem [shape: f32[12,16], index: 9, kind: input, shape index: {}]   ;;  %s4862_s10 = inlined_call_operand.vmem [shape: f32[12,1], index: 10, kind: input, shape index: {}]   ;;  %s4863_s11 = inlined_call_operand.vmem [shape: f32[12,12], index: 11, kind: input, shape index: {}]   ;;  %s4864_s12 = inlined_call_operand.vmem [shape: f32[12,1], index: 12, kind: input, shape index: {}]   ;;  %s4865_s13 = inlined_call_operand.vmem [shape: f32[9,1,256], index: 13, kind: input, shape index: {}]   ;;  %s4866_s14 = inlined_call_operand.vmem [shape: f32[2,4,12,256], index: 14, kind: output, shape index: {}]  }
   0x1   :  { %4902 = sst [smem:[#allocation23_spill]] %s4852_s0 }
   0x2   :  { %4903 = sst [smem:[#allocation24_spill]] %s4853_s1 }
   0x3   :  { %4904 = sst [smem:[#allocation25_spill]] %s4854_s2 }
   0x4   :  { %4905 = sst [smem:[#allocation26_spill]] %s4855_s3 }
   0x5   :  { %4906 = sst [smem:[#allocation27_spill]] %s4856_s4 }
   0x6   :  { %4907 = sst [smem:[#allocation28_spill]] %s4857_s5 }
   0x7   :  { %4908 = sst [smem:[#allocation29_spill]] %s4858_s6 }
   0x8   :  { %4909 = sst [smem:[#allocation30_spill]] %s4859_s7 }
   0x9   :  { %4910 = sst [smem:[#allocation31_spill]] %s4860_s8 }
   0xa   :  { %4911 = sst [smem:[#allocation32_spill]] %s4861_s9 }
   0xb   :  { %4912 = sst [smem:[#allocation33_spill]] %s4862_s10 }
   0xc   :  { %4913 = sst [smem:[#allocation34_spill]] %s4863_s11 }
   0xd   :  { %4914 = sst [smem:[#allocation35_spill]] %s4864_s12 }
   0xe   :  { %4915 = sst [smem:[#allocation36_spill]] %s4865_s13 }
   0xf   :  { %4916 = sst [smem:[#allocation37_spill]] %s4866_s14 }
  0x10   :  { %19 = vsyncpa [#allocation3], 0 }
  0x11   :  { %21 = vsyncpa [#allocation3 + $0x1], 0 }
  0x12   :  { %22 = vsyncpa [#allocation5], 0 }
  0x13   :  { %24 = vsyncpa [#allocation5 + $0x1], 0 }
  0x14   :  { %25 = vsyncpa [#allocation8], 0  ;;  %s3790_s29 = smov 0   ;;  %s3792_s30 = smov 0  }
  0x15   :  { %s3794_s15 = smov 0   ;;  %s3796_s16 = smov 0  }
  0x16   :  { %s3798_s17 = smov 0   ;;  %s3800_s18 = smov 0  }
  0x17   :  { %s3802_s19 = smov 0   ;;  %s3804_s20 = smov 0  }
  0x18   :  { %s3806_s21 = smov 0   ;;  %s3808_s22 = smov 0  }
  0x19   :  { %s3810_s23 = smov 0   ;;  %s3812_s24 = smov 0  }
  0x1a   :  { %s3814_s25 = smov 0   ;;  %s3816_s26 = smov 0  }
  0x1b LB: > { %4917 = sst [smem:[#allocation13_spill]] %s3658_s17  ;;  %s3861_s27 = sadd.s32 1, %s3686_s24  ;;  %s3694_s26 = sphi %s3816_s26, %s31_s26   ;;  %s3690_s25 = sphi %s3814_s25, %s4995_s25   ;;  %s3686_s24 = sphi %s3812_s24, %s4994_s24   ;;  %s3682_s23 = sphi %s3810_s23, %s4993_s23   ;;  %s3678_s22 = sphi %s3808_s22, %s4992_s22   ;;  %s3674_s21 = sphi %s3806_s21, %s4991_s21   ;;  %s3670_s20 = sphi %s3804_s20, %s4990_s20   ;;  %s3666_s19 = sphi %s3802_s19, %s4980_s19   ;;  %s3662_s18 = sphi %s3800_s18, %s4989_s18   ;;  %s3658_s17 = sphi %s3798_s17, %s4988_s17   ;;  %s3654_s16 = sphi %s3796_s16, %s4978_s16   ;;  %s3650_s15 = sphi %s3794_s15, %s4987_s15   ;;  %s3646_s30 = sphi %s3792_s30, %s4986_s30   ;;  %s3642_s29 = sphi %s3790_s29, %s4985_s29  }
  0x1c   : > { %4918 = sst [smem:[#allocation14_spill]] %s3670_s20  ;;  %s43_s28 = sadd.s32 1, %s3690_s25 }
  0x1d   : > { %4919 = sst [smem:[#allocation15_spill]] %s3678_s22  ;;  %p41_p0 = scmp.ge.s32.totalorder %s3861_s27, 4 }
  0x1e   : > { %4920 = sst [smem:[#allocation16_spill]] %s3682_s23  ;;  %p4881_p1 = scmp.eq.s32.totalorder %s3694_s26, 0 }
  0x1f   : > { %4921 = sst [smem:[#allocation17_spill]] %s3686_s24  ;;  %p93_p2 = scmp.ne.s32.totalorder %s3662_s18, %s3658_s17 }
  0x20   : > { %4922 = sst [smem:[#allocation18_spill]] %s3690_s25  ;;  %s4997_s28 = smov (!%p41_p0, %s43_s28), %s3690_s25 }
  0x21   : > { %s3870_s11 = scalar_select %p41_p0, 0, %s3861_s27  }
  0x22   : > { %p3879_p3 = por %p93_p2, %p4881_p1  ;;  %p99_p4 = scmp.ne.s32.totalorder %s3658_s17, %s3654_s16 }
  0x23   : > { %p4880_p5 = scmp.lt.s32.totalorder %s3694_s26, 8  ;;  %s3887_s13 = sshll.u32 %s3690_s25, 4 }
  0x24   : > { %s485_s14 = sand.u32 1, %s3694_s26   ;;  %s487_s12 = sand.u32 1, %s3662_s18  }
  0x25   : > { %s2846_s10 = sshll.u32 %s487_s12, 5  ;;  %s2847_s8 = sshll.u32 %s3686_s24, 2 }
  0x26   : > { %s495_s22 = sadd.s32 %s2847_s8, %s3887_s13  ;;  %s489_s5 = scalar_lea.vmem [#allocation4], %s2846_s10 }
  0x27   : > { %s498_s6 = sshll.u32 %s489_s5, 4  ;;  %s2849_s4 = sshll.u32 %s495_s22, 7  ;;  %s3893_s6 = int_to_ptr.vmem [resolvable:$true] %s498_s6 }
  0x28   : > { %s4924_s1 = sld [smem:[#allocation24_spill]]  ;;  %p3904_p6 = pnand %p4880_p5, %p3879_p3 }
  0x29   : > { %s3908_s5 = scalar_lea.sflag [#allocation5], %s485_s14 }
  0x2a   : > { %4926 = sst [smem:[#allocation19_spill]] %s3908_s5  ;;  %p3452_p8 = pneg %p3904_p6 }
  0x2e   : > { %s3898_s2 = scalar_lea.hbm %s4924_s1, %s2849_s4  ;;  %s3455_s9 = scalar_lea.hbm %s4924_s1, 4096 }
  0x2f   : > { %s3450_s8 = scalar_lea.hbm %s3898_s2, 512  ;;  %p3456_p11 = scmp.lt.u32.totalorder %s3898_s2, %s4924_s1 }
  0x30   : > { %p3451_p7 = scmp.ne.s32.totalorder %s3898_s2, %s3450_s8  ;;  %p3457_p12 = scmp.lt.u32.totalorder %s3455_s9, %s3450_s8 }
  0x31   : > { %p3459_p0 = scmp.lt.u32.totalorder %s3450_s8, %s3898_s2 }
  0x32   : > { %p3453_p9 = pnand %p3452_p8, %p3451_p7  ;;  %p3458_p13 = por %p3457_p12, %p3456_p11 }
  0x34   : > { %p3454_p10 = pneg %p3453_p9  ;;  %p3460_p2 = por %p3459_p0, %p3458_p13 }
  0x36   : > { %p3461_p3 = pnand %p3460_p2, %p3454_p10 }
  0x38   : > { %3464 = shalt.err (!%p3461_p3)
}
  0x39   : > { %s3465_s14 = scalar_lea.vmem %s3893_s6, 512  ;;  %s3696_s23 = smov [#allocation4]  }
  0x3a   : > { %p3466_p7 = scmp.ne.s32.totalorder %s3893_s6, %s3465_s14  ;;  %s3470_s3 = sshll.u32 %s3696_s23, 4  ;;  %s3471_s3 = int_to_ptr.vmem [resolvable:$false] %s3470_s3 }
  0x3b   : > { %s3472_s4 = scalar_lea.vmem %s3471_s3, 1024  ;;  %p3473_p1 = scmp.lt.s32.totalorder %s3893_s6, %s3471_s3 }
  0x3c   : > { %p3468_p9 = pnand %p3466_p7, %p3452_p8  ;;  %p3474_p11 = scmp.lt.s32.totalorder %s3472_s4, %s3465_s14 }
  0x3e   : > { %p3469_p5 = pneg %p3468_p9  ;;  %p3475_p12 = por %p3474_p11, %p3473_p1 }
  0x40   : > { %p3476_p13 = pnand %p3475_p12, %p3469_p5 }
  0x42   : > { %3479 = shalt.err (!%p3476_p13)
}
  0x43   : > { %s4883_s8 = smov 256   ;;  %s4885_s9 = smov 16  }
  0x44   : > { %3069 = dma.hbm_to_vmem [thread:$0]  (!%p3904_p6), %s3898_s2, 512, %s3893_s6, %s3908_s5, %s4883_s8, %s4883_s8, %s4885_s9  }
  0x45   : > { %s4882_s10 = sadd.s32 4294967295, %s3694_s26   ;;  %p2838_p5 = scmp.ge.s32.totalorder %s3694_s26, 1 }
  0x46   : > { %p3942_p1 = scmp.eq.s32.totalorder %s4882_s10, 0  ;;  %p403_p8 = scmp.lt.s32.totalorder %s3694_s26, 9 }
  0x47   : > { %s3699_s2 = smov [#allocation7]   ;;  %s4933_s7 = sld [smem:[#allocation30_spill]] }
  0x48   : > { %s4927_s22 = scalar_select %p3942_p1, 1, 0 }
  0x49   : > { %p3953_p10 = por %p99_p4, %p3942_p1  ;;  %p3957_p0 = pnand %p2838_p5, %p403_p8 }
  0x4a   : > { %s427_s6 = sshll.u32 %s3699_s2, 4  ;;  %s428_s6 = int_to_ptr.vmem [resolvable:$true] %s427_s6 }
  0x4b   : > { %s4928_s14 = scalar_select %p3953_p10, 1, 0 }
  0x4c   : > { %s4930_s12 = scalar_select %p3957_p0, 1, 0 }
  0x4d   : > { %4929 = sst [smem:[#allocation20_spill]] %s4928_s14  ;;  %p3059_p6 = pneg %p3957_p0 }
  0x4e   : > { %4931 = sst [smem:[#allocation21_spill]] %s4930_s12  ;;  %s3480_s4 = scalar_lea.hbm %s4933_s7, 2304 }
  0x4f   : > { %p3965_p2 = pnand %p3059_p6, %p3942_p1  ;;  %p3481_p4 = scmp.ne.s32.totalorder %s4933_s7, %s3480_s4 }
  0x50   : > { %p3487_p11 = scmp.lt.u32.totalorder %s3480_s4, %s4933_s7 }
  0x51   : > { %p3482_p3 = pneg %p3965_p2 }
  0x53   : > { %p3483_p7 = pnand %p3482_p3, %p3481_p4 }
  0x55   : > { %p3484_p9 = pneg %p3483_p7 }
  0x57   : > { %p3489_p12 = pnand %p3487_p11, %p3484_p9 }
  0x59   : > { %3492 = shalt.err (!%p3489_p12)
}
  0x5a   : > { %s3493_s1 = scalar_lea.vmem %s428_s6, 2304  ;;  %p3501_p6 = scmp.lt.s32.totalorder %s428_s6, %s428_s6 }
  0x5b   : > { %p3494_p13 = scmp.ne.s32.totalorder %s428_s6, %s3493_s1  ;;  %p3502_p10 = scmp.lt.s32.totalorder %s3493_s1, %s3493_s1 }
  0x5d   : > { %p3496_p5 = pnand %p3494_p13, %p3482_p3  ;;  %p3503_p0 = por %p3502_p10, %p3501_p6 }
  0x5f   : > { %p3497_p8 = pneg %p3496_p5 }
  0x61   : > { %p3504_p1 = pnand %p3503_p0, %p3497_p8 }
  0x63   : > { %3507 = shalt.err (!%p3504_p1)
}
  0x64   : > { %s3700_s8 = smov 128   ;;  %s3701_s9 = smov 8  }
  0x65   : > { %3062 = dma.hbm_to_vmem [thread:$0]  (!%p3965_p2), %s4933_s7, 2304, %s428_s6, [#allocation8], %s3700_s8, %s3700_s8, %s3701_s9  }
  0x66   : > { %p45_p1 = scmp.ge.s32.totalorder %s4997_s28, 2  ;;  %s2836_s16 = sadd.s32 4294967295, %s3686_s24 }
  0x67   : > { %p48_p10 = scmp.gt.s32.totalorder %s2836_s16, 0  ;;  %s2837_s3 = sadd.s32 4294967295, %s3870_s11 }
  0x68   : > { %s4999_s28 = smov (%p45_p1, %s4997_s28), 0  ;;  %p51_p0 = scmp.gt.s32.totalorder %s2837_s3, 0 }
  0x69   : > { %4934 = sst [smem:[#allocation22_spill]] %s4999_s28  ;;  %s5001_s16 = smov (!%p48_p10, %s2836_s16), 0 }
  0x6a   : > { %s3993_s23 = ssub.s32 %s3690_s25, %s4999_s28  ;;  %s58_s4 = sadd.s32 1, %s3674_s21 }
  0x6b   : > { %p65_p2 = scmp.ne.s32.totalorder %s3674_s21, %s3670_s20  ;;  %s5003_s3 = smov (!%p51_p0, %s2837_s3), 0 }
  0x6c   : > { %p4935_p4 = scmp.eq.s32.totalorder %s3694_s26, 0  ;;  %p71_p7 = scmp.ne.s32.totalorder %s3670_s20, %s3666_s19 }
  0x6d   : > { %s54_s2 = ssub.s32 %s5001_s16, %s5003_s3  ;;  %s4937_s8 = ssub.s32 %s3686_s24, %s3870_s11 }
  0x6e   : > { %p4000_p3 = por %p4935_p4, %p65_p2  ;;  %s83_s9 = sor.u32 %s4937_s8, %s3993_s23 }
  0x6f   : > { %s55_s10 = sor.u32 %s54_s2, %s3993_s23  ;;  %p4938_p9 = scmp.ne.s32.totalorder %s4927_s22, 0 }
  0x70   : > { %p56_p12 = scmp.eq.s32.totalorder %s55_s10, 0  ;;  %p84_p13 = scmp.eq.s32.totalorder %s83_s9, 0 }
  0x71   : > { %p4013_p11 = por %p4938_p9, %p71_p7  ;;  %s459_s7 = sand.u32 1, %s3674_s21  }
  0x72   : > { %s2843_s28 = sshll.u32 %s5001_s16, 2  ;;  %s4940_s14 = sadd.s32 1, %s3662_s18 }
  0x73   : > { %s4939_s1 = scalar_select %p4013_p11, 1, 0 }
  0x74   : > { %s4019_s25 = scalar_select %p56_p12, %s3674_s21, %s58_s4  }
  0x75   : > { %s4024_s17 = scalar_select %p84_p13, %s3662_s18, %s4940_s14  }
  0x76   : > { %s2841_s19 = sshll.u32 %s459_s7, 5  ;;  %s472_s3 = sadd.s32 %s3887_s13, %s2843_s28 }
  0x77   : > { %s2845_s8 = sshll.u32 %s472_s3, 7  ;;  %s463_s24 = scalar_lea.vmem [#allocation2], %s2841_s19 }
  0x78   : > { %s475_s20 = sshll.u32 %s463_s24, 4  ;;  %s4941_s0 = sld [smem:[#allocation23_spill]]  ;;  %s4032_s20 = int_to_ptr.vmem [resolvable:$true] %s475_s20 }
  0x79   : > { %p4942_p5 = scmp.lt.s32.totalorder %s3694_s26, 8  ;;  %s4042_s24 = scalar_lea.sflag [#allocation3], %s459_s7 }
  0x7b   : > { %p4038_p8 = pnand %p4942_p5, %p4000_p3 }
  0x7d   : > { %p3510_p1 = pneg %p4038_p8 }
  0x7e   : > { %s4030_s5 = scalar_lea.hbm %s4941_s0, %s2845_s8  ;;  %s3513_s4 = scalar_lea.hbm %s4941_s0, 4096 }
  0x7f   : > { %s3508_s28 = scalar_lea.hbm %s4030_s5, 512  ;;  %p3514_p2 = scmp.lt.u32.totalorder %s4030_s5, %s4941_s0 }
  0x80   : > { %p3509_p6 = scmp.ne.s32.totalorder %s4030_s5, %s3508_s28  ;;  %p3515_p4 = scmp.lt.u32.totalorder %s3513_s4, %s3508_s28 }
  0x81   : > { %p3517_p7 = scmp.lt.u32.totalorder %s3508_s28, %s4030_s5 }
  0x82   : > { %p3511_p10 = pnand %p3510_p1, %p3509_p6  ;;  %p3516_p3 = por %p3515_p4, %p3514_p2 }
  0x84   : > { %p3512_p0 = pneg %p3511_p10  ;;  %p3518_p12 = por %p3517_p7, %p3516_p3 }
  0x86   : > { %p3519_p13 = pnand %p3518_p12, %p3512_p0 }
  0x88   : > { %3522 = shalt.err (!%p3519_p13)
}
  0x89   : > { %s3523_s7 = scalar_lea.vmem %s4032_s20, 512  ;;  %s3702_s10 = smov [#allocation2]  }
  0x8a   : > { %p3524_p5 = scmp.ne.s32.totalorder %s4032_s20, %s3523_s7  ;;  %s3528_s19 = sshll.u32 %s3702_s10, 4  ;;  %s3529_s19 = int_to_ptr.vmem [resolvable:$false] %s3528_s19 }
  0x8b   : > { %s3530_s3 = scalar_lea.vmem %s3529_s19, 1024  ;;  %p3531_p11 = scmp.lt.s32.totalorder %s4032_s20, %s3529_s19 }
  0x8c   : > { %p3526_p6 = pnand %p3524_p5, %p3510_p1  ;;  %p3532_p2 = scmp.lt.s32.totalorder %s3530_s3, %s3523_s7 }
  0x8e   : > { %p3527_p10 = pneg %p3526_p6  ;;  %p3533_p4 = por %p3532_p2, %p3531_p11 }
  0x90   : > { %p3534_p3 = pnand %p3533_p4, %p3527_p10 }
  0x92   : > { %3537 = shalt.err (!%p3534_p3)
}
  0x93   : > { %s4944_s8 = smov 16   ;;  %s4945_s2 = smov 256  }
  0x94   : > { %3066 = dma.hbm_to_vmem [thread:$0]  (!%p4038_p8), %s4030_s5, 512, %s4032_s20, %s4042_s24, %s4945_s2, %s4945_s2, %s4944_s8  }
  0x95   : > { %p110_p11 = scmp.lt.s32.totalorder %s3861_s27, 3  ;;  %s112_s14 = sadd.s32 1, %s3870_s11 }
  0x96   : > { %p113_p1 = scmp.lt.s32.totalorder %s112_s14, 3  ;;  %s120_s28 = sadd.s32 1, %s3650_s15 }
  0x97   : > { %s5005_s27 = smov (!%p110_p11, %s3861_s27), 3  ;;  %p127_p0 = scmp.ne.s32.totalorder %s3650_s15, %s3646_s30 }
  0x98   : > { %s5007_s14 = smov (!%p113_p1, %s112_s14), 3  ;;  %p133_p7 = scmp.ne.s32.totalorder %s3646_s30, %s3642_s29 }
  0x99   : > { %s116_s12 = ssub.s32 %s5005_s27, %s5007_s14  ;;  %s510_s16 = sand.u32 1, %s3650_s15  }
  0x9a   : > { %s117_s4 = sor.u32 %s116_s12, %s3993_s23  ;;  %p4946_p12 = scmp.eq.s32.totalorder %s3694_s26, 0 }
  0x9b   : > { %p118_p5 = scmp.eq.s32.totalorder %s117_s4, 0  ;;  %p4087_p6 = por %p133_p7, %p4938_p9 }
  0x9c   : > { %p129_p13 = por %p127_p0, %p4946_p12  ;;  %s2850_s5 = sshll.u32 %s510_s16, 5 }
  0x9d   : > { %s2851_s24 = sshll.u32 %s5005_s27, 2  ;;  %s512_s10 = scalar_lea.vmem [#allocation6], %s2850_s5 }
  0x9e   : > { %s4092_s6 = scalar_select %p118_p5, %s3650_s15, %s120_s28  }
  0x9f   : > { %s521_s9 = sadd.s32 %s2851_s24, %s3887_s13  ;;  %s524_s29 = sshll.u32 %s512_s10, 4  ;;  %s4100_s29 = int_to_ptr.vmem [resolvable:$true] %s524_s29 }
  0xa0   : > { %s2853_s7 = sshll.u32 %s521_s9, 7  ;;  %s4948_s14 = sld [smem:[#allocation25_spill]] }
  0xa1   : > { %p4949_p9 = scmp.lt.s32.totalorder %s3694_s26, 8 }
  0xa3   : > { %p4104_p8 = pnand %p4949_p9, %p129_p13 }
  0xa5   : > { %p3540_p2 = pneg %p4104_p8 }
  0xa6   : > { %s4098_s23 = scalar_lea.hbm %s4948_s14, %s2853_s7  ;;  %s3543_s16 = scalar_lea.hbm %s4948_s14, 4096 }
  0xa7   : > { %s3538_s13 = scalar_lea.hbm %s4098_s23, 512  ;;  %p3544_p11 = scmp.lt.u32.totalorder %s4098_s23, %s4948_s14 }
  0xa8   : > { %p3539_p10 = scmp.ne.s32.totalorder %s4098_s23, %s3538_s13  ;;  %p3545_p1 = scmp.lt.u32.totalorder %s3543_s16, %s3538_s13 }
  0xa9   : > { %p3547_p7 = scmp.lt.u32.totalorder %s3538_s13, %s4098_s23 }
  0xaa   : > { %p3541_p4 = pnand %p3540_p2, %p3539_p10  ;;  %p3546_p0 = por %p3545_p1, %p3544_p11 }
  0xac   : > { %p3542_p3 = pneg %p3541_p4  ;;  %p3548_p12 = por %p3547_p7, %p3546_p0 }
  0xae   : > { %p3549_p13 = pnand %p3548_p12, %p3542_p3 }
  0xb0   : > { %3552 = shalt.err (!%p3549_p13)
}
  0xb1   : > { %s3553_s24 = scalar_lea.vmem %s4100_s29, 512  ;;  %s3703_s9 = smov [#allocation6]  }
  0xb2   : > { %p3554_p5 = scmp.ne.s32.totalorder %s4100_s29, %s3553_s24  ;;  %s3558_s7 = sshll.u32 %s3703_s9, 4  ;;  %s3559_s7 = int_to_ptr.vmem [resolvable:$false] %s3558_s7 }
  0xb3   : > { %s3560_s10 = scalar_lea.vmem %s3559_s7, 1024  ;;  %p3561_p4 = scmp.lt.s32.totalorder %s4100_s29, %s3559_s7 }
  0xb4   : > { %p3556_p9 = pnand %p3554_p5, %p3540_p2  ;;  %p3562_p11 = scmp.lt.s32.totalorder %s3560_s10, %s3553_s24 }
  0xb6   : > { %p3557_p10 = pneg %p3556_p9  ;;  %p3563_p1 = por %p3562_p11, %p3561_p4 }
  0xb8   : > { %p3564_p0 = pnand %p3563_p1, %p3557_p10 }
  0xba   : > { %3567 = shalt.err (!%p3564_p0)
}
  0xbb   : > { %s4951_s19 = sld [smem:[#allocation19_spill]]  ;;  %s4952_s3 = sld [smem:[#allocation21_spill]] }
  0xc1   : > { %3072 = dma.hbm_to_vmem [thread:$0]  (!%p4104_p8), %s4098_s23, 512, %s4100_s29, %s4951_s19, %s4945_s2, %s4945_s2, %s4944_s8  }
  0xc2   : > { %p4953_p2 = scmp.ne.s32.totalorder %s4952_s3, 0 }
  0xc3   : > { %s4954_s13 = sld [smem:[#allocation14_spill]] (!%p4953_p2)  ;;  %p4955_p3 = scmp.ne.s32.totalorder (!%p4953_p2), %s4939_s1, 0 }
  0xc4   : > { %536 = sbr.rel (%p4953_p2) target bundleno = 1580 (0x62c), region = 76 }
  0xc9   : > { %s538_s28 = sand.u32 (!%p4953_p2), 1, %s4954_s13  }
  0xca   : > { %s2855_s12 = sshll.u32 (!%p4953_p2), %s538_s28, 5  ;;  %s539_s16 = scalar_lea.sflag (!%p4953_p2), [#allocation3], %s538_s28 }
  0xcb   : > { %s542_s4 = scalar_lea.vmem [#allocation2], %s2855_s12 }
  0xcc   : > { %3625 = dma.done.wait (%p4955_p3), %s539_s16, 512  }
  0xcd   : > { %3627 = vsyncadd (%p4955_p3), %s539_s16, 4294966784  ;;  %s4956_s27 = sadd.s32 4294967295, %s3694_s26   ;;  %s4957_s5 = sld [smem:[#allocation13_spill]] }
  0xce   : > { %s4958_s24 = sld [smem:[#allocation20_spill]]  ;;  %s547_s9 = sand.u32 1, %s4956_s27  }
  0xcf   : > { %s548_s29 = scalar_lea.sflag [#allocation5], %s547_s9 }
  0xd3   : > { %s549_s8 = sand.u32 1, %s4957_s5  }
  0xd4   : > { %s2856_s2 = sshll.u32 %s549_s8, 5  ;;  %p4959_p8 = scmp.ne.s32.totalorder %s4958_s24, 0 }
  0xd5   : > { %s4147_s23 = scalar_lea.vmem [#allocation4], %s2856_s2 }
  0xd6   : > { %3629 = dma.done.wait (%p4959_p8), %s548_s29, 512  }
  0xd7   : > { %3631 = vsyncadd (%p4959_p8), %s548_s29, 4294966784  ;;  %s558_s7 = sand.u32 1, %s3646_s30  }
  0xd8   : > { %s2857_s1 = sshll.u32 %s558_s7, 5 }
  0xd9   : > { %s4154_s10 = scalar_lea.vmem [#allocation6], %s2857_s1 }
  0xda   : > { %3633 = dma.done.wait (%p4087_p6), %s548_s29, 512  }
  0xdb   : > { %3635 = vsyncadd (%p4087_p6), %s548_s29, 4294966784  ;;  %p4960_p7 = scmp.ne.s32.totalorder %s4927_s22, 0 }
  0xdd   : > { %3637 = dma.done.wait (%p4960_p7), [#allocation8], 2304  }
  0xde   : > { %3639 = vsyncadd (%p4960_p7), [#allocation8], 4294964992  ;;  %v3704_v0 = vmov 0.0   ;;  %v3705_v1 = vmov 0   ;;  %v639_v2 = vld [vmem:[%s542_s4 + $0x8] sm:$0xff]  ;;  %v641_v3 = vld [vmem:[%s542_s4 + $0x18] sm:$0xff] }
  0xdf   : > { %735 = vmatprep.mubr.f32.mxu0 %v3704_v0  ;;  %812 = vmatprep.mubr.f32.mxu1 %v3704_v0  ;;  %v643_v4 = vld [vmem:[%s4147_s23 + $0x8] sm:$0xff]  ;;  %v2907_v5 = vpack.c.bf16 %v641_v3, %v639_v2  ;;  %v645_v6 = vld [vmem:[%s4147_s23 + $0x18] sm:$0xff]  ;;  %v638_v7 = vld [vmem:[%s542_s4] sm:$0xff]  ;;  %s4961_s19 = sld [smem:[#allocation26_spill]]  ;;  %vm664_vm0 = vcmask 130048   ;;  %s4963_s12 = sld [smem:[#allocation27_spill]] }
  0xe0   : > { %3204 = vset.pattern.permute.xlu0 %v3705_v1  ;;  %3205 = vset.pattern.permute.xlu1 %v3705_v1  ;;  %v640_v8 = vld [vmem:[%s542_s4 + $0x10] sm:$0xff]  ;;  %v2911_v9 = vpack.c.bf16 %v645_v6, %v643_v4  ;;  %v642_v11 = vld [vmem:[%s4147_s23] sm:$0xff]  ;;  %v647_v15 = vld [vmem:[%s4154_s10 + $0x8] sm:$0xff]  ;;  %s4964_s8 = sld [smem:[#allocation29_spill]]  ;;  %s4966_s22 = sld [smem:[#allocation15_spill]]  ;;  %vm1234_vm6 = vcmask 392192  }
  0xe1   : > { %v2909_v10 = vpack.c.bf16 %v640_v8, %v638_v7  ;;  %v644_v12 = vld [vmem:[%s4147_s23 + $0x10] sm:$0xff]  ;;  %2908 = vmatprep.subr.bf16.mxu0 %v2907_v5  ;;  %v649_v16 = vld [vmem:[%s4154_s10 + $0x18] sm:$0xff]  ;;  %v646_v18 = vld [vmem:[%s4154_s10] sm:$0xff]  ;;  %s3706_s27 = smov 17   ;;  %s3707_s5 = smov 16   ;;  %vm2578_vm10 = vcmask 1043456  }
  0xe2   : > { %v2913_v13 = vpack.c.bf16 %v644_v12, %v642_v11  ;;  %2912 = vmatprep.subr.bf16.mxu1 %v2911_v9  ;;  %v2915_v17 = vpack.c.bf16 %v649_v16, %v647_v15  ;;  %v648_v19 = vld [vmem:[%s4154_s10 + $0x10] sm:$0xff]  ;;  %s4965_s10 = sld [smem:[#allocation28_spill]]  ;;  %s3708_s24 = smov 15   ;;  %vm3714_vm11 = vmmov 1   ;;  %vm2571_vm13 = vcmask 97280  }
  0xe3   : > { %2910 = vmatpush1.bf16.msra.mxu0 %v2909_v10  ;;  %v2917_v21 = vpack.c.bf16 %v648_v19, %v646_v18  ;;  %s3709_s9 = smov 1   ;;  %s3710_s2 = smov 127   ;;  %vm3044_vm12 = vmpackc.low %vm2578_vm10, %vm3714_vm11 }
  0xe4   : > { %2914 = vmatpush1.bf16.msra.mxu1 %v2913_v13  ;;  %2916 = vmatprep.subr.bf16.mxu0 %v2915_v17  ;;  %s3711_s29 = smov 113   ;;  %s3712_s7 = smov 112  }
  0xe5   : > { %s4962_s3 = smov %s4961_s19  ;;  %v650_v14 = vld [vmem:[%s4961_s19] sm:$0xff]  ;;  %v653_v22 = vld [vmem:[%s4963_s12 + $0x8] sm:$0xff]  ;;  %s3713_s1 = smov 111  }
  0xe6   : > { %v652_v20 = vld [vmem:[%s4963_s12] sm:$0xff]  ;;  %2862 = vmatmul.mubr.msk.f32.vlgmr.msra.gmra.mrb[0].mxu0 %vm664_vm0, %v650_v14  ;;  %v651_v23 = vld [vmem:[%s4962_s3 + $0x8] sm:$0xff]  ;;  %p1177_p6 = scmp.gt.s32.totalorder %s4966_s22, 0  ;;  %p631_p12 = scmp.lt.s32.totalorder %s4966_s22, 3 }
  0xe7   : > { %656 = vperm.xlu0 %3204, %v652_v20   ;;  %2864 = vmatmul.mubr.msk.f32.vlgmr.msra.gmra.mrb[0].mxu1 %vm664_vm0, %v650_v14  ;;  %v916_v24 = vld [vmem:[%s4964_s8] sm:$0xff]  ;;  %v917_v25 = vld [vmem:[%s4964_s8 + $0x8] sm:$0xff]  ;;  %s4972_s20 = sld [smem:[#allocation32_spill]] }
  0xe8   : > { %741 = vmatprep.mubr.f32.mxu0 %v3704_v0  ;;  %818 = vmatprep.mubr.f32.mxu1 %v3704_v0  ;;  %v914_v63 = vld [vmem:[%s4965_s10] sm:$0xff]  ;;  %v915_v7 = vld [vmem:[%s4965_s10 + $0x8] sm:$0xff]  ;;  %s1178_s13 = scalar_select %p1177_p6, 1, 0 }
  0xe9   : > { %2918 = vmatpush1.bf16.msra.mxu0 %v2917_v21  ;;  %920 = vperm.xlu1 %3205, %v916_v24   ;;  %s1181_s28 = scalar_select %p631_p12, 1, 0 }
  0xea   : > { %2863 = vmatmul.mubr.msk.f32.gmra.mrb[2].mxu0 %vm664_vm0, %v651_v23  ;;  %s1179_s16 = scvt.s32.f32 %s1178_s13  ;;  %s4967_s13 = sld [smem:[#allocation31_spill]] }
  0xeb   : > { %661 = vperm.xlu0 %3204, %v653_v22   ;;  %2865 = vmatmul.mubr.msk.f32.gmra.mrb[2].mxu1 %vm664_vm0, %v651_v23  ;;  %s1182_s4 = scvt.s32.f32 %s1181_s28  ;;  %s5009_s22 = smov (!%p631_p12, %s4966_s22), 3 }
  0xec   : > { %889 = vmatprep.mubr.f32.mxu0 %v3704_v0  ;;  %998 = vmatprep.mubr.f32.mxu1 %v3704_v0  ;;  %v1183_v21 = vstv %s1179_s16  ;;  %s4970_s16 = sld [smem:[#allocation36_spill]] }
  0xed   : > { %925 = vperm.xlu1 %3205, %v917_v25   ;;  %s4973_s28 = smov %s4972_s20 }
  0xee   : > { %2866 = vmatmul.mubr.msk.f32.vlgmr.msra.gmra.mrb[4].mxu0 %vm664_vm0, %v650_v14 }
  0xef   : > { %895 = vmatprep.mubr.f32.mxu0 %v3704_v0 }
  0xf2   : > { %2867 = vmatmul.mubr.msk.f32.gmra.mrb[6].mxu0 %vm664_vm0, %v651_v23 }
  0xf3   : > { %1075 = vmatprep.mubr.f32.mxu0 %v3704_v0 }
 0x166   : > { %v657_v26 = vpop.permute.xlu0 %656 }
 0x168   : > { %v921_v9 = vpop.permute.xlu1 %920 }
 0x16a   : > { %v662_v33 = vpop.permute.xlu0 %661 }
 0x16c   : > { %v926_v18 = vpop.permute.xlu1 %925 }
 0x1b9   : > { %v737_v27 = vpop.f32.mrb[0].mxu0 }
 0x1ba   : > { %v814_v28 = vpop.f32.mrb[0].mxu1  ;;  %v739_v29 = vpop.f32.mrb[1].mxu0  ;;  %v738_v31 = vadd.f32 %v737_v27, %v657_v26 }
 0x1bb   : > { %v816_v30 = vpop.f32.mrb[1].mxu1  ;;  %v815_v32 = vadd.f32 %v814_v28, %v657_v26  ;;  %v740_v34 = vadd.f32 %v739_v29, %v657_v26 }
 0x1bc   : > { %v817_v36 = vadd.f32 %v816_v30, %v657_v26  ;;  %v902_v43 = vmax.f32 %v738_v31, 0.0 }
 0x1bd   : > { %v743_v35 = vpop.f32.mrb[2].mxu0  ;;  %v904_v46 = vmax.f32 %v815_v32, 0.0  ;;  %v903_v47 = vmax.f32 %v740_v34, 0.0  ;;  %v1188_v32 = vstv %s1182_s4  ;;  %s4971_s4 = smov %s4970_s16 }
 0x1be   : > { %v744_v37 = vadd.f32 %v743_v35, %v662_v33  ;;  %v820_v38 = vpop.f32.mrb[2].mxu1  ;;  %v745_v39 = vpop.f32.mrb[3].mxu0  ;;  %v905_v51 = vmax.f32 %v817_v36, 0.0 }
 0x1bf   : > { %v821_v40 = vadd.f32 %v820_v38, %v662_v33  ;;  %v746_v41 = vadd.f32 %v745_v39, %v662_v33  ;;  %v822_v42 = vpop.f32.mrb[3].mxu1 }
 0x1c0   : > { %v908_v44 = vmax.f32 %v744_v37, 0.0  ;;  %v823_v45 = vadd.f32 %v822_v42, %v662_v33 }
 0x1c1   : > { %v910_v48 = vmax.f32 %v821_v40, 0.0  ;;  %v909_v49 = vmax.f32 %v746_v41, 0.0  ;;  %v891_v50 = vpop.f32.mrb[4].mxu0 }
 0x1c2   : > { %v2921_v52 = vpack.c.bf16 %v908_v44, %v902_v43  ;;  %v911_v53 = vmax.f32 %v823_v45, 0.0  ;;  %v893_v54 = vpop.f32.mrb[5].mxu0  ;;  %v892_v58 = vadd.f32 %v891_v50, %v657_v26 }
 0x1c3   : > { %v2925_v55 = vpack.c.bf16 %v910_v48, %v904_v46  ;;  %v2919_v56 = vpack.c.bf16 %v909_v49, %v903_v47  ;;  %v894_v59 = vadd.f32 %v893_v54, %v657_v26 }
 0x1c4   : > { %v2923_v57 = vpack.c.bf16 %v911_v53, %v905_v51  ;;  %v906_v2 = vmax.f32 %v892_v58, 0.0 }
 0x1c5   : > { %v897_v60 = vpop.f32.mrb[6].mxu0  ;;  %2920 = vmatprep.subr.bf16.mxu1 %v2919_v56  ;;  %v907_v4 = vmax.f32 %v894_v59, 0.0 }
 0x1c6   : > { %v898_v61 = vadd.f32 %v897_v60, %v662_v33  ;;  %2924 = vmatprep.subr.bf16.mxu0 %v2923_v57  ;;  %v899_v62 = vpop.f32.mrb[7].mxu0  ;;  %2922 = vmatpush1.bf16.msra.mxu1 %v2921_v52 }
 0x1c7   : > { %v900_v1 = vadd.f32 %v899_v62, %v662_v33  ;;  %2926 = vmatpush1.bf16.msra.mxu0 %v2925_v55 }
 0x1c8   : > { %v912_v3 = vmax.f32 %v898_v61, 0.0 }
 0x1c9   : > { %v913_v5 = vmax.f32 %v900_v1, 0.0  ;;  %2868 = vmatmul.mubr.msk.f32.vlgmr.msra.gmra.mrb[4].mxu1 %vm664_vm0, %v914_v63 }
 0x1ca   : > { %v2929_v6 = vpack.c.bf16 %v912_v3, %v906_v2  ;;  %2870 = vmatmul.mubr.msk.f32.vlgmr.msra.gmra.mrb[8].mxu0 %vm664_vm0, %v914_v63  ;;  %1004 = vmatprep.mubr.f32.mxu1 %v3704_v0 }
 0x1cb   : > { %v2927_v8 = vpack.c.bf16 %v913_v5, %v907_v4  ;;  %1081 = vmatprep.mubr.f32.mxu0 %v3704_v0 }
 0x1cd   : > { %2869 = vmatmul.mubr.msk.f32.gmra.mrb[6].mxu1 %vm664_vm0, %v915_v7  ;;  %2928 = vmatprep.subr.bf16.mxu1 %v2927_v8 }
 0x1ce   : > { %2871 = vmatmul.mubr.msk.f32.gmra.mrb[10].mxu0 %vm664_vm0, %v915_v7  ;;  %2930 = vmatpush1.bf16.msra.mxu1 %v2929_v6  ;;  %v2436_v6 = vld [vmem:[%s4967_s13] sm:$0xff] }
 0x1cf   : > { %1152 = vmatprep.mubr.f32.mxu1 %v3704_v0  ;;  %1305 = vmatprep.mubr.f32.mxu0 %v3704_v0 }
 0x1d1   : > { %2872 = vmatmul.mubr.msk.f32.vlgmr.msra.gmra.mrb[8].mxu1 %vm664_vm0, %v914_v63 }
 0x1d2   : > { %1158 = vmatprep.mubr.f32.mxu1 %v3704_v0 }
 0x1d5   : > { %2873 = vmatmul.mubr.msk.f32.gmra.mrb[10].mxu1 %vm664_vm0, %v915_v7  ;;  %v2437_v7 = vld [vmem:[%s4967_s13 + $0x8] sm:$0xff] }
 0x1d6   : > { %1448 = vmatprep.mubr.f32.mxu1 %v3704_v0 }
 0x29c   : > { %v1000_v10 = vpop.f32.mrb[4].mxu1 }
 0x29d   : > { %v1001_v11 = vadd.f32 %v1000_v10, %v921_v9  ;;  %v1077_v12 = vpop.f32.mrb[8].mxu0  ;;  %v1002_v13 = vpop.f32.mrb[5].mxu1 }
 0x29e   : > { %v1003_v14 = vadd.f32 %v1002_v13, %v921_v9  ;;  %v1079_v15 = vpop.f32.mrb[9].mxu0  ;;  %v4226_v16 = vadd.f32 %v1077_v12, %v921_v9 }
 0x29f   : > { %v1165_v17 = vmax.f32 %v1001_v11, 0.0  ;;  %v1080_v19 = vadd.f32 %v1079_v15, %v921_v9 }
 0x2a0   : > { %v1006_v20 = vpop.f32.mrb[6].mxu1  ;;  %v1166_v22 = vmax.f32 %v1003_v14, 0.0  ;;  %v1167_v29 = vmax.f32 %v4226_v16, 0.0 }
 0x2a1   : > { %v1007_v23 = vadd.f32 %v1006_v20, %v926_v18  ;;  %v1083_v24 = vpop.f32.mrb[10].mxu0  ;;  %v1008_v25 = vpop.f32.mrb[7].mxu1  ;;  %v4229_v33 = vmul.f32 %v1183_v21, %v1165_v17  ;;  %v1168_v34 = vmax.f32 %v1080_v19, 0.0 }
 0x2a2   : > { %v1084_v26 = vadd.f32 %v1083_v24, %v926_v18  ;;  %v1009_v27 = vadd.f32 %v1008_v25, %v926_v18  ;;  %v1085_v28 = vpop.f32.mrb[11].mxu0  ;;  %v4231_v38 = vmul.f32 %v1183_v21, %v1166_v22 }
 0x2a3   : > { %v1171_v30 = vmax.f32 %v1007_v23, 0.0  ;;  %v1086_v31 = vadd.f32 %v1085_v28, %v926_v18 }
 0x2a4   : > { %v1173_v35 = vmax.f32 %v1084_v26, 0.0  ;;  %v1172_v36 = vmax.f32 %v1009_v27, 0.0  ;;  %v1154_v37 = vpop.f32.mrb[8].mxu1 }
 0x2a5   : > { %v4233_v39 = vmul.f32 %v1183_v21, %v1171_v30  ;;  %v1174_v40 = vmax.f32 %v1086_v31, 0.0  ;;  %v1155_v41 = vadd.f32 %v1154_v37, %v921_v9  ;;  %v1156_v42 = vpop.f32.mrb[9].mxu1 }
 0x2a6   : > { %v4235_v43 = vmul.f32 %v1183_v21, %v1172_v36  ;;  %v1157_v44 = vadd.f32 %v1156_v42, %v921_v9  ;;  %v4237_v45 = vpack.i.bf16 %v1173_v35, %v1167_v29  ;;  %v4279_v3 = vpack.c.bf16 %v1173_v35, %v1167_v29 }
 0x2a7   : > { %v1169_v46 = vmax.f32 %v1155_v41, 0.0  ;;  %v4239_v47 = vpack.i.bf16 %v1174_v40, %v1168_v34  ;;  %v3256_v55 = vpack.i.bf16 %v4233_v39, %v4229_v33  ;;  %v2981_v1 = vpack.c.bf16 %v4233_v39, %v4229_v33 }
 0x2a8   : > { %v1170_v48 = vmax.f32 %v1157_v44, 0.0  ;;  %3207 = vrot.lane.b32.xlu0 %v4237_v45, %s3706_s27  ;;  %v1160_v49 = vpop.f32.mrb[10].mxu1  ;;  %v3286_v56 = vpack.i.bf16 %v4235_v43, %v4231_v38  ;;  %v2979_v63 = vpack.c.bf16 %v4235_v43, %v4231_v38  ;;  %v4277_v2 = vpack.c.bf16 %v1174_v40, %v1168_v34 }
 0x2a9   : > { %v4243_v50 = vmul.f32 %v1188_v32, %v1169_v46  ;;  %3232 = vrot.lane.b32.xlu1 %v4239_v47, %s3706_s27  ;;  %v1161_v51 = vadd.f32 %v1160_v49, %v926_v18  ;;  %v1162_v52 = vpop.f32.mrb[11].mxu1 }
 0x2aa   : > { %v4247_v53 = vmul.f32 %v1188_v32, %v1170_v48  ;;  %v1163_v54 = vadd.f32 %v1162_v52, %v926_v18  ;;  %v1217_v18 = vlaneseq }
 0x2ab   : > { %v1175_v57 = vmax.f32 %v1161_v51, 0.0 }
 0x2ac   : > { %v1176_v58 = vmax.f32 %v1163_v54, 0.0  ;;  %3212 = vrot.lane.b32.xlu0 %v4237_v45, %s3707_s5  ;;  %v4342_v21 = vand.u32 127, %v1217_v18 }
 0x2ad   : > { %v4255_v59 = vmul.f32 %v1188_v32, %v1175_v57  ;;  %3237 = vrot.lane.b32.xlu1 %v4239_v47, %s3707_s5 }
 0x2ae   : > { %v4259_v60 = vmul.f32 %v1188_v32, %v1176_v58  ;;  %vm1219_vm1 = vcmp.lt.s32.totalorder %v4342_v21, 17  ;;  %vm1362_vm2 = vcmp.lt.s32.totalorder %v4342_v21, 16  ;;  %vm1506_vm3 = vcmp.lt.s32.totalorder %v4342_v21, 15 }
 0x2af   : > { %v3316_v61 = vpack.i.bf16 %v4255_v59, %v4243_v50  ;;  %v2989_v5 = vpack.c.bf16 %v4255_v59, %v4243_v50  ;;  %vm1650_vm4 = vcmp.lt.s32.totalorder %v4342_v21, 1  ;;  %vm1884_vm5 = vcmp.lt.s32.totalorder %v4342_v21, 127 }
 0x2b0   : > { %3217 = vrot.lane.b32.xlu0 %v4237_v45, %s3708_s24  ;;  %v3341_v62 = vpack.i.bf16 %v4259_v60, %v4247_v53  ;;  %v2987_v4 = vpack.c.bf16 %v4259_v60, %v4247_v53  ;;  %vm2028_vm7 = vcmp.lt.s32.totalorder %v4342_v21, 113  ;;  %vm2172_vm8 = vcmp.lt.s32.totalorder %v4342_v21, 112 }
 0x2b1   : > { %3242 = vrot.lane.b32.xlu1 %v4239_v47, %s3708_s24  ;;  %vm2316_vm9 = vcmp.lt.s32.totalorder %v4342_v21, 111  ;;  %v2331_v21 = vld [vmem:[#allocation7 + $0x88] sm:$0xff] }
 0x2b4   : > { %3222 = vrot.lane.b32.xlu0 %v4237_v45, %s3709_s9 }
 0x2b5   : > { %3247 = vrot.lane.b32.xlu1 %v4239_v47, %s3709_s9 }
 0x2b8   : > { %3227 = vrot.lane.b32.xlu0 %v4237_v45, %s3710_s2 }
 0x2b9   : > { %3252 = vrot.lane.b32.xlu1 %v4239_v47, %s3710_s2 }
 0x2bc   : > { %3257 = vrot.lane.b32.xlu0 %v3256_v55, %s3706_s27 }
 0x2bd   : > { %3287 = vrot.lane.b32.xlu1 %v3286_v56, %s3706_s27 }
 0x2c0   : > { %3262 = vrot.lane.b32.xlu0 %v3256_v55, %s3707_s5 }
 0x2c1   : > { %3292 = vrot.lane.b32.xlu1 %v3286_v56, %s3707_s5 }
 0x2c4   : > { %3267 = vrot.lane.b32.xlu0 %v3256_v55, %s3708_s24 }
 0x2c5   : > { %3297 = vrot.lane.b32.xlu1 %v3286_v56, %s3708_s24 }
 0x2c8   : > { %3272 = vrot.lane.b32.xlu0 %v3256_v55, %s3709_s9 }
 0x2c9   : > { %3302 = vrot.lane.b32.xlu1 %v3286_v56, %s3709_s9 }
 0x2cc   : > { %3277 = vrot.lane.b32.xlu0 %v3256_v55, %s3710_s2 }
 0x2cd   : > { %3307 = vrot.lane.b32.xlu1 %v3286_v56, %s3710_s2 }
 0x2d0   : > { %3282 = vrot.lane.b32.xlu0 %v3256_v55, %s3711_s29 }
 0x2d1   : > { %3312 = vrot.lane.b32.xlu1 %v3286_v56, %s3711_s29 }
 0x2d4   : > { %3317 = vrot.lane.b32.xlu0 %v3316_v61, %s3706_s27 }
 0x2d5   : > { %3342 = vrot.lane.b32.xlu1 %v3341_v62, %s3706_s27  ;;  %s4974_s27 = sld [smem:[#allocation16_spill]] }
 0x2d8   : > { %3322 = vrot.lane.b32.xlu0 %v4237_v45, %s3711_s29 }
 0x2d9   : > { %3347 = vrot.lane.b32.xlu1 %v4239_v47, %s3711_s29 }
 0x2db   : > { %p629_p13 = scmp.lt.s32.totalorder %s4974_s27, 1 }
 0x2dc   : > { %3327 = vrot.lane.b32.xlu0 %v3316_v61, %s3707_s5 }
 0x2dd   : > { %3367 = vrot.lane.b32.xlu1 %v3341_v62, %s3707_s5  ;;  %s4968_s5 = sld [smem:[#allocation33_spill]]  ;;  %s5011_s27 = smov (!%p629_p13, %s4974_s27), 1 }
 0x2de   : > { %s2860_s19 = sshll.u32 %s5011_s27, 4 }
 0x2e0   : > { %3332 = vrot.lane.b32.xlu0 %v3316_v61, %s3708_s24 }
 0x2e1   : > { %3372 = vrot.lane.b32.xlu1 %v3341_v62, %s3708_s24 }
 0x2e3   : > { %v2458_v8 = vld [vmem:[%s4968_s5] sm:$0xff]  ;;  %v2459_v9 = vld [vmem:[%s4968_s5 + $0x8] sm:$0xf] }
 0x2e4   : > { %3337 = vrot.lane.b32.xlu0 %v3316_v61, %s3709_s9 }
 0x2e5   : > { %3377 = vrot.lane.b32.xlu1 %v3286_v56, %s3712_s7 }
 0x2e8   : > { %3352 = vrot.lane.b32.xlu0 %v3316_v61, %s3710_s2 }
 0x2e9   : > { %3387 = vrot.lane.b32.xlu1 %v3341_v62, %s3709_s9 }
 0x2ec   : > { %3357 = vrot.lane.b32.xlu0 %v3316_v61, %s3711_s29 }
 0x2ed   : > { %3392 = vrot.lane.b32.xlu1 %v3286_v56, %s3713_s1 }
 0x2f0   : > { %3362 = vrot.lane.b32.xlu0 %v3256_v55, %s3712_s7 }
 0x2f1   : > { %3402 = vrot.lane.b32.xlu1 %v4239_v47, %s3712_s7 }
 0x2f4   : > { %3382 = vrot.lane.b32.xlu0 %v3256_v55, %s3713_s1 }
 0x2f5   : > { %3412 = vrot.lane.b32.xlu1 %v3341_v62, %s3710_s2  ;;  %s4975_s2 = sld [smem:[#allocation34_spill]] }
 0x2f8   : > { %3397 = vrot.lane.b32.xlu0 %v4237_v45, %s3712_s7 }
 0x2f9   : > { %3417 = vrot.lane.b32.xlu1 %v3341_v62, %s3711_s29 }
 0x2fc   : > { %3407 = vrot.lane.b32.xlu0 %v4237_v45, %s3713_s1 }
 0x2fd   : > { %3422 = vrot.lane.b32.xlu1 %v4239_v47, %s3713_s1 }
 0x300   : > { %3427 = vrot.lane.b32.xlu0 %v3316_v61, %s3712_s7 }
 0x301   : > { %3437 = vrot.lane.b32.xlu1 %v3341_v62, %s3712_s7  ;;  %s4969_s7 = sld [smem:[#allocation35_spill]] }
 0x304   : > { %3432 = vrot.lane.b32.xlu0 %v3316_v61, %s3713_s1 }
 0x305   : > { %3442 = vrot.lane.b32.xlu1 %v3341_v62, %s3713_s1  ;;  %s4976_s1 = sld [smem:[#allocation37_spill]] }
 0x307   : > { %v2559_v10 = vld [vmem:[%s4969_s7] sm:$0xff]  ;;  %v2560_v11 = vld [vmem:[%s4969_s7 + $0x8] sm:$0xf] }
 0x308   : > { %2440 = vperm.xlu0 %3204, %v2436_v6  }
 0x309   : > { %2445 = vperm.xlu1 %3205, %v2437_v7  }
 0x30c   : > { %2462 = vperm.xlu0 %3204, %v2458_v8  }
 0x30d   : > { %2467 = vperm.xlu1 %3205, %v2459_v9  }
 0x310   : > { %2563 = vperm.xlu0 %3204, %v2559_v10  }
 0x311   : > { %2568 = vperm.xlu1 %3205, %v2560_v11  }
 0x31a   : > { %v3208_v12 = vpop.permute.xlu0 %3207 }
 0x31b   : > { %v3233_v13 = vpop.permute.xlu1 %3232  ;;  %v3210_v24 = vunpack.i.h.bf16 %v3208_v12  ;;  %v3209_v25 = vunpack.i.l.bf16 %v3208_v12 }
 0x31c   : > { %v3235_v26 = vunpack.i.h.bf16 %v3233_v13  ;;  %v3234_v27 = vunpack.i.l.bf16 %v3233_v13 }
 0x31e   : > { %v3213_v14 = vpop.permute.xlu0 %3212  ;;  %v1222_v35 = vsel %vm1219_vm1, %v3209_v25, %v3234_v27  ;;  %v1223_v36 = vsel %vm1219_vm1, %v3210_v24, %v3235_v26  ;;  %v1228_v56 = vsel %vm1219_vm1, %v3234_v27, %v3209_v25  ;;  %v1229_v61 = vsel %vm1219_vm1, %v3235_v26, %v3210_v24 }
 0x31f   : > { %v3238_v15 = vpop.permute.xlu1 %3237  ;;  %v3215_v37 = vunpack.i.h.bf16 %v3213_v14  ;;  %v3214_v40 = vunpack.i.l.bf16 %v3213_v14  ;;  %v2935_v62 = vpack.c.bf16 %v1223_v36, %v1222_v35  ;;  %v2937_v24 = vpack.c.bf16 %v1229_v61, %v1228_v56 }
 0x320   : > { %v3240_v41 = vunpack.i.h.bf16 %v3238_v15  ;;  %v3239_v42 = vunpack.i.l.bf16 %v3238_v15 }
 0x322   : > { %v4333_v16 = vpop.permute.xlu0 %3217  ;;  %v1365_v6 = vsel %vm1362_vm2, %v3214_v40, %v3239_v42  ;;  %v1366_v7 = vsel %vm1362_vm2, %v3215_v37, %v3240_v41  ;;  %v1371_v25 = vsel %vm1362_vm2, %v3239_v42, %v3214_v40  ;;  %v1372_v26 = vsel %vm1362_vm2, %v3240_v41, %v3215_v37 }
 0x323   : > { %v4335_v17 = vpop.permute.xlu1 %3242  ;;  %v2947_v27 = vpack.c.bf16 %v1366_v7, %v1365_v6  ;;  %v3220_v35 = vunpack.i.h.bf16 %v4333_v16  ;;  %v3219_v36 = vunpack.i.l.bf16 %v4333_v16 }
 0x324   : > { %v3245_v37 = vunpack.i.h.bf16 %v4335_v17  ;;  %v3244_v40 = vunpack.i.l.bf16 %v4335_v17 }
 0x326   : > { %v4337_v19 = vpop.permute.xlu0 %3222  ;;  %v4406_v16 = vsel %vm1506_vm3, %v3245_v37, %v3220_v35  ;;  %v1510_v56 = vsel %vm1506_vm3, %v3220_v35, %v3245_v37 }
 0x327   : > { %v4339_v20 = vpop.permute.xlu1 %3247 }
 0x32a   : > { %v4344_v22 = vpop.permute.xlu0 %3227 }
 0x32b   : > { %v4346_v23 = vpop.permute.xlu1 %3252 }
 0x32e   : > { %v3258_v28 = vpop.permute.xlu0 %3257 }
 0x32f   : > { %v3260_v29 = vunpack.i.h.bf16 %v3258_v28  ;;  %v3259_v30 = vunpack.i.l.bf16 %v3258_v28  ;;  %v3288_v31 = vpop.permute.xlu1 %3287 }
 0x330   : > { %v3290_v32 = vunpack.i.h.bf16 %v3288_v31  ;;  %v3289_v34 = vunpack.i.l.bf16 %v3288_v31 }
 0x332   : > { %v1226_v44 = vsel %vm1219_vm1, %v3289_v34, %v3259_v30  ;;  %v1227_v45 = vsel %vm1219_vm1, %v3290_v32, %v3260_v29  ;;  %v3263_v46 = vpop.permute.xlu0 %3262  ;;  %v1220_v47 = vsel %vm1219_vm1, %v3259_v30, %v3289_v34  ;;  %v1221_v48 = vsel %vm1219_vm1, %v3260_v29, %v3290_v32 }
 0x333   : > { %v2933_v49 = vpack.c.bf16 %v1227_v45, %v1226_v44  ;;  %v3265_v51 = vunpack.i.h.bf16 %v3263_v46  ;;  %v3264_v52 = vunpack.i.l.bf16 %v3263_v46  ;;  %v3293_v54 = vpop.permute.xlu1 %3292  ;;  %v2931_v55 = vpack.c.bf16 %v1221_v48, %v1220_v47 }
 0x334   : > { %v3295_v57 = vunpack.i.h.bf16 %v3293_v54  ;;  %v3294_v58 = vunpack.i.l.bf16 %v3293_v54  ;;  %v2949_v30 = vpack.c.bf16 %v1372_v26, %v1371_v25  ;;  %v4402_v48 = vsel %vm1506_vm3, %v3244_v40, %v3219_v36 }
 0x335   : > { %2932 = vmatprep.subr.bf16.mxu0 %v2931_v55  ;;  %v1509_v55 = vsel %vm1506_vm3, %v3219_v36, %v3244_v40  ;;  %v2961_v35 = vpack.c.bf16 %v4406_v16, %v4402_v48  ;;  %v1232_v40 = vld [vmem:[#allocation7] sm:$0xff] }
 0x336   : > { %v1369_v8 = vsel %vm1362_vm2, %v3294_v58, %v3264_v52  ;;  %v1370_v9 = vsel %vm1362_vm2, %v3295_v57, %v3265_v51  ;;  %v3268_v10 = vpop.permute.xlu0 %3267  ;;  %2934 = vmatpush1.bf16.msra.mxu0 %v2933_v49  ;;  %v1363_v11 = vsel %vm1362_vm2, %v3264_v52, %v3294_v58  ;;  %v1364_v12 = vsel %vm1362_vm2, %v3265_v51, %v3295_v57 }
 0x337   : > { %v2945_v13 = vpack.c.bf16 %v1370_v9, %v1369_v8  ;;  %v3298_v14 = vpop.permute.xlu1 %3297  ;;  %2936 = vmatprep.subr.bf16.mxu0 %v2935_v62  ;;  %v2943_v15 = vpack.c.bf16 %v1364_v12, %v1363_v11  ;;  %v3270_v42 = vunpack.i.h.bf16 %v3268_v10  ;;  %v3269_v44 = vunpack.i.l.bf16 %v3268_v10 }
 0x338   : > { %v3300_v45 = vunpack.i.h.bf16 %v3298_v14  ;;  %v3299_v46 = vunpack.i.l.bf16 %v3298_v14  ;;  %v3224_v57 = vunpack.i.l.bf16 %v4337_v19  ;;  %v3249_v58 = vunpack.i.l.bf16 %v4339_v20 }
 0x339   : > { %2944 = vmatprep.subr.bf16.mxu1 %v2943_v15  ;;  %v3225_v11 = vunpack.i.h.bf16 %v4337_v19  ;;  %v3250_v12 = vunpack.i.h.bf16 %v4339_v20 }
 0x33a   : > { %v4382_v28 = vpop.permute.xlu0 %3272  ;;  %2938 = vmatpush1.bf16.msra.mxu0 %v2937_v24  ;;  %2946 = vmatpush1.bf16.msra.mxu1 %v2945_v13  ;;  %v1507_v61 = vsel %vm1506_vm3, %v3269_v44, %v3299_v46  ;;  %v1508_v62 = vsel %vm1506_vm3, %v3270_v42, %v3300_v45  ;;  %v1513_v24 = vsel %vm1506_vm3, %v3299_v46, %v3269_v44 }
 0x33b   : > { %v4384_v29 = vpop.permute.xlu1 %3302  ;;  %2948 = vmatprep.subr.bf16.mxu1 %v2947_v27  ;;  %v1514_v25 = vsel %vm1506_vm3, %v3300_v45, %v3270_v42  ;;  %v3275_v26 = vunpack.i.h.bf16 %v4382_v28  ;;  %v3274_v27 = vunpack.i.l.bf16 %v4382_v28  ;;  %v2955_v20 = vpack.c.bf16 %v1508_v62, %v1507_v61  ;;  %v1233_v62 = vld [vmem:[#allocation7 + $0x8] sm:$0xff] }
 0x33c   : > { %v3304_v19 = vunpack.i.l.bf16 %v4384_v29  ;;  %v4444_v36 = vsel %vm1650_vm4, %v3249_v58, %v3224_v57  ;;  %v2959_v28 = vpack.c.bf16 %v1510_v56, %v1509_v55  ;;  %v4449_v42 = vsel %vm1650_vm4, %v3250_v12, %v3225_v11 }
 0x33d   : > { %v4453_v46 = vsel %vm1650_vm4, %v3224_v57, %v3249_v58 }
 0x33e   : > { %v4386_v31 = vpop.permute.xlu0 %3277  ;;  %2950 = vmatpush1.bf16.msra.mxu1 %v2949_v30  ;;  %v3305_v30 = vunpack.i.h.bf16 %v4384_v29 }
 0x33f   : > { %v4388_v32 = vpop.permute.xlu1 %3307 }
 0x342   : > { %v4390_v34 = vpop.permute.xlu0 %3282 }
 0x343   : > { %v4396_v41 = vpop.permute.xlu1 %3312 }
 0x346   : > { %v3318_v47 = vpop.permute.xlu0 %3317 }
 0x347   : > { %v3320_v17 = vunpack.i.h.bf16 %v3318_v47  ;;  %v3319_v49 = vunpack.i.l.bf16 %v3318_v47  ;;  %v3343_v51 = vpop.permute.xlu1 %3342  ;;  %v2957_v47 = vpack.c.bf16 %v1514_v25, %v1513_v24  ;;  %v1657_v25 = vsel %vm1650_vm4, %v3304_v19, %v3274_v27 }
 0x348   : > { %v3345_v52 = vunpack.i.h.bf16 %v3343_v51  ;;  %v3344_v54 = vunpack.i.l.bf16 %v3343_v51  ;;  %v3229_v51 = vunpack.i.l.bf16 %v4344_v22 }
 0x34a   : > { %v1230_v6 = vsel %vm1219_vm1, %v3344_v54, %v3319_v49  ;;  %v1231_v7 = vsel %vm1219_vm1, %v3345_v52, %v3320_v17  ;;  %v4422_v8 = vpop.permute.xlu0 %3322  ;;  %v1224_v9 = vsel %vm1219_vm1, %v3319_v49, %v3344_v54  ;;  %v1225_v10 = vsel %vm1219_vm1, %v3320_v17, %v3345_v52 }
 0x34b   : > { %v2941_v13 = vpack.c.bf16 %v1231_v7, %v1230_v6  ;;  %v4430_v14 = vpop.permute.xlu1 %3347  ;;  %v2939_v15 = vpack.c.bf16 %v1225_v10, %v1224_v9  ;;  %v4457_v17 = vsel %vm1650_vm4, %v3225_v11, %v3250_v12  ;;  %v3230_v49 = vunpack.i.h.bf16 %v4344_v22 }
 0x34c   : > { %v1651_v52 = vsel %vm1650_vm4, %v3274_v27, %v3304_v19  ;;  %v1652_v54 = vsel %vm1650_vm4, %v3275_v26, %v3305_v30  ;;  %v3255_v12 = vunpack.i.h.bf16 %v4346_v23  ;;  %v1376_v27 = vld [vmem:[#allocation7 + $0x10] sm:$0xff]  ;;  %v3310_v19 = vunpack.i.h.bf16 %v4388_v32 }
 0x34d   : > { %2940 = vmatprep.subr.bf16.mxu0 %v2939_v15 }
 0x34e   : > { %v3328_v37 = vpop.permute.xlu0 %3327  ;;  %2942 = vmatpush1.bf16.msra.mxu0 %v2941_v13  ;;  %v3254_v13 = vunpack.i.l.bf16 %v4346_v23 }
 0x34f   : > { %v3330_v29 = vunpack.i.h.bf16 %v3328_v37  ;;  %v3329_v44 = vunpack.i.l.bf16 %v3328_v37  ;;  %v3368_v45 = vpop.permute.xlu1 %3367  ;;  %2956 = vmatprep.subr.bf16.mxu0 %v2955_v20  ;;  %v1658_v20 = vsel %vm1650_vm4, %v3305_v30, %v3275_v26  ;;  %v3279_v37 = vunpack.i.l.bf16 %v4386_v31 }
 0x350   : > { %v3370_v48 = vunpack.i.h.bf16 %v3368_v45  ;;  %v3369_v16 = vunpack.i.l.bf16 %v3368_v45  ;;  %v3280_v30 = vunpack.i.h.bf16 %v4386_v31 }
 0x351   : > { %2874 = vmatmul.mubr.msk.f32.vlgmr.msra.gmra.mrb[12].mxu0 %vm1234_vm6, %v1232_v40  ;;  %v2967_v40 = vpack.c.bf16 %v1652_v54, %v1651_v52  ;;  %v2969_v52 = vpack.c.bf16 %v1658_v20, %v1657_v25  ;;  %v3350_v25 = vunpack.i.h.bf16 %v4430_v14  ;;  %v3349_v20 = vunpack.i.l.bf16 %v4430_v14  ;;  %v1521_v14 = vld [vmem:[#allocation7 + $0x28] sm:$0xff] }
 0x352   : > { %v1373_v55 = vsel %vm1362_vm2, %v3369_v16, %v3329_v44  ;;  %v1374_v56 = vsel %vm1362_vm2, %v3370_v48, %v3330_v29  ;;  %v3333_v57 = vpop.permute.xlu0 %3332  ;;  %2958 = vmatpush1.bf16.msra.mxu0 %v2957_v47  ;;  %v1367_v58 = vsel %vm1362_vm2, %v3329_v44, %v3369_v16  ;;  %v1368_v61 = vsel %vm1362_vm2, %v3330_v29, %v3370_v48 }
 0x353   : > { %v2953_v6 = vpack.c.bf16 %v1374_v56, %v1373_v55  ;;  %v3335_v7 = vunpack.i.h.bf16 %v3333_v57  ;;  %v3334_v9 = vunpack.i.l.bf16 %v3333_v57  ;;  %v3373_v10 = vpop.permute.xlu1 %3372  ;;  %2960 = vmatprep.subr.bf16.mxu0 %v2959_v28  ;;  %v2951_v11 = vpack.c.bf16 %v1368_v61, %v1367_v58  ;;  %1311 = vmatprep.mubr.f32.mxu0 %v3704_v0 }
 0x354   : > { %v3375_v15 = vunpack.i.h.bf16 %v3373_v10  ;;  %v3374_v24 = vunpack.i.l.bf16 %v3373_v10  ;;  %v3309_v28 = vunpack.i.l.bf16 %v4388_v32  ;;  %v4501_v55 = vsel %vm1884_vm5, %v3229_v51, %v3254_v13 }
 0x355   : > { %2952 = vmatprep.subr.bf16.mxu1 %v2951_v11  ;;  %2875 = vmatmul.mubr.msk.f32.gmra.mrb[14].mxu0 %vm1234_vm6, %v1233_v62  ;;  %v2971_v56 = vpack.c.bf16 %v4457_v17, %v4453_v46  ;;  %v4512_v57 = vsel %vm1884_vm5, %v3230_v49, %v3255_v12  ;;  %v4525_v17 = vsel %vm1884_vm5, %v3254_v13, %v3229_v51  ;;  %v3285_v58 = vunpack.i.h.bf16 %v4390_v34 }
 0x356   : > { %v1517_v29 = vsel %vm1506_vm3, %v3374_v24, %v3334_v9  ;;  %v1518_v44 = vsel %vm1506_vm3, %v3375_v15, %v3335_v7  ;;  %v3338_v45 = vpop.permute.xlu0 %3337  ;;  %2954 = vmatpush1.bf16.msra.mxu1 %v2953_v6  ;;  %2962 = vmatpush1.bf16.msra.mxu0 %v2961_v35  ;;  %v1511_v26 = vsel %vm1506_vm3, %v3334_v9, %v3374_v24  ;;  %v3284_v61 = vunpack.i.l.bf16 %v4390_v34 }
 0x357   : > { %v2965_v47 = vpack.c.bf16 %v1518_v44, %v1517_v29  ;;  %v4492_v48 = vpop.permute.xlu1 %3377  ;;  %2968 = vmatprep.subr.bf16.mxu1 %v2967_v40  ;;  %v1512_v16 = vsel %vm1506_vm3, %v3335_v7, %v3375_v15  ;;  %1592 = vmatprep.mubr.f32.mxu0 %v3704_v0  ;;  %v2973_v35 = vpack.c.bf16 %v4449_v42, %v4444_v36  ;;  %v1377_v42 = vld [vmem:[#allocation7 + $0x18] sm:$0xff]  ;;  %v3315_v62 = vunpack.i.h.bf16 %v4396_v41  ;;  %v1520_v7 = vld [vmem:[#allocation7 + $0x20] sm:$0xff] }
 0x358   : > { %v2963_v54 = vpack.c.bf16 %v1512_v16, %v1511_v26  ;;  %v1891_v46 = vsel %vm1884_vm5, %v3309_v28, %v3279_v37  ;;  %v1892_v9 = vsel %vm1884_vm5, %v3310_v19, %v3280_v30  ;;  %v3340_v10 = vunpack.i.h.bf16 %v3338_v45 }
 0x359   : > { %2876 = vmatmul.mubr.msk.f32.vlgmr.msra.gmra.mrb[12].mxu1 %vm1234_vm6, %v1376_v27  ;;  %v3339_v11 = vunpack.i.l.bf16 %v3338_v45  ;;  %v3314_v34 = vunpack.i.l.bf16 %v4396_v41  ;;  %v3325_v51 = vunpack.i.h.bf16 %v4422_v8  ;;  %v3324_v13 = vunpack.i.l.bf16 %v4422_v8  ;;  %v1664_v27 = vld [vmem:[#allocation7 + $0x30] sm:$0xff] }
 0x35a   : > { %2964 = vmatprep.subr.bf16.mxu0 %v2963_v54  ;;  %v4515_v36 = vpop.permute.xlu0 %3352  ;;  %2970 = vmatpush1.bf16.msra.mxu1 %v2969_v52  ;;  %v1894_v44 = vsel %vm1884_vm5, %v3255_v12, %v3230_v49  ;;  %v1885_v33 = vsel %vm1884_vm5, %v3279_v37, %v3309_v28  ;;  %v1886_v39 = vsel %vm1884_vm5, %v3280_v30, %v3310_v19 }
 0x35b   : > { %2966 = vmatpush1.bf16.msra.mxu0 %v2965_v47  ;;  %v3388_v6 = vpop.permute.xlu1 %3387  ;;  %2972 = vmatprep.subr.bf16.mxu1 %v2971_v56  ;;  %v4577_v22 = vsel %vm2028_vm7, %v3284_v61, %v3314_v34  ;;  %v4581_v23 = vsel %vm2028_vm7, %v3285_v58, %v3315_v62  ;;  %v2991_v31 = vpack.c.bf16 %v1892_v9, %v1891_v46  ;;  %v3379_v56 = vunpack.i.l.bf16 %v4492_v48 }
 0x35c   : > { %v3390_v15 = vunpack.i.h.bf16 %v3388_v6  ;;  %v3389_v24 = vunpack.i.l.bf16 %v3388_v6  ;;  %2980 = vmatprep.subr.bf16.mxu0 %v2979_v63  ;;  %1454 = vmatprep.mubr.f32.mxu1 %v3704_v0  ;;  %v2035_v32 = vsel %vm2028_vm7, %v3314_v34, %v3284_v61  ;;  %v4587_v49 = vsel %vm2028_vm7, %v3324_v13, %v3349_v20  ;;  %v1771_v61 = vld [vmem:[#allocation7 + $0x40] sm:$0xff] }
 0x35d   : > { %2877 = vmatmul.mubr.msk.f32.gmra.mrb[14].mxu1 %vm1234_vm6, %v1377_v42  ;;  %v2036_v37 = vsel %vm2028_vm7, %v3315_v62, %v3285_v58  ;;  %v2997_v28 = vpack.c.bf16 %v4512_v57, %v4501_v55  ;;  %v2037_v26 = vsel %vm2028_vm7, %v3349_v20, %v3324_v13  ;;  %v2038_v30 = vsel %vm2028_vm7, %v3350_v25, %v3325_v51  ;;  %v1665_v58 = vld [vmem:[#allocation7 + $0x38] sm:$0xff] }
 0x35e   : > { %v1661_v40 = vsel %vm1650_vm4, %v3389_v24, %v3339_v11  ;;  %v1662_v38 = vsel %vm1650_vm4, %v3390_v15, %v3340_v10  ;;  %2879 = vmatmul.mubr.msk.f32.vlgmr.msra.gmra.mrb[16].mxu0 %vm1234_vm6, %v1520_v7  ;;  %v4547_v43 = vpop.permute.xlu0 %3357  ;;  %2974 = vmatpush1.bf16.msra.mxu1 %v2973_v35  ;;  %v1655_v63 = vsel %vm1650_vm4, %v3339_v11, %v3389_v24  ;;  %v3380_v55 = vunpack.i.h.bf16 %v4492_v48 }
 0x35f   : > { %v2977_v41 = vpack.c.bf16 %v1662_v38, %v1661_v40  ;;  %2982 = vmatpush1.bf16.msra.mxu0 %v2981_v1  ;;  %v4554_v8 = vpop.permute.xlu1 %3392  ;;  %1598 = vmatprep.mubr.f32.mxu0 %v3704_v0  ;;  %v1656_v29 = vsel %vm1650_vm4, %v3340_v10, %v3390_v15  ;;  %v2993_v19 = vpack.c.bf16 %v1886_v39, %v1885_v33  ;;  %v3355_v53 = vunpack.i.h.bf16 %v4515_v36  ;;  %v1772_v40 = vld [vmem:[#allocation7 + $0x48] sm:$0xff] }
 0x360   : > { %2984 = vmatprep.subr.bf16.mxu0 %v4277_v2  ;;  %v2975_v1 = vpack.c.bf16 %v1656_v29, %v1655_v63  ;;  %1736 = vmatprep.mubr.f32.mxu1 %v3704_v0  ;;  %v4591_v2 = vsel %vm2028_vm7, %v3325_v51, %v3350_v25  ;;  %v3005_v47 = vpack.c.bf16 %v4581_v23, %v4577_v22  ;;  %v3354_v57 = vunpack.i.l.bf16 %v4515_v36 }
 0x361   : > { %v3009_v16 = vpack.c.bf16 %v4591_v2, %v4587_v49  ;;  %v3003_v35 = vpack.c.bf16 %v2036_v37, %v2035_v32  ;;  %v3360_v42 = vunpack.i.h.bf16 %v4547_v43  ;;  %v3359_v46 = vunpack.i.l.bf16 %v4547_v43 }
 0x362   : > { %2880 = vmatmul.mubr.msk.f32.gmra.mrb[18].mxu0 %vm1234_vm6, %v1521_v14  ;;  %2976 = vmatprep.subr.bf16.mxu1 %v2975_v1  ;;  %v3363_v12 = vpop.permute.xlu0 %3362  ;;  %v3394_v62 = vunpack.i.l.bf16 %v4554_v8 }
 0x363   : > { %2978 = vmatpush1.bf16.msra.mxu1 %v2977_v41  ;;  %2986 = vmatpush1.bf16.msra.mxu0 %v4279_v3  ;;  %v4600_v45 = vpop.permute.xlu1 %3402  ;;  %v2995_v3 = vpack.c.bf16 %v1894_v44, %v4525_v17  ;;  %v3365_v52 = vunpack.i.h.bf16 %v3363_v12  ;;  %v3364_v54 = vunpack.i.l.bf16 %v3363_v12  ;;  %v3395_v17 = vunpack.i.h.bf16 %v4554_v8 }
 0x364   : > { %2988 = vmatprep.subr.bf16.mxu0 %v2987_v4  ;;  %2992 = vmatprep.subr.bf16.mxu1 %v2991_v31  ;;  %v3007_v4 = vpack.c.bf16 %v2038_v30, %v2037_v26  ;;  %v3405_v6 = vunpack.i.h.bf16 %v4600_v45 }
 0x365   : > { %1843 = vmatprep.mubr.f32.mxu0 %v3704_v0  ;;  %v4633_v9 = vsel %vm2172_vm8, %v3365_v52, %v3380_v55  ;;  %v2179_v59 = vsel %vm2172_vm8, %v3379_v56, %v3364_v54  ;;  %v2180_v34 = vsel %vm2172_vm8, %v3380_v55, %v3365_v52  ;;  %v2173_v51 = vsel %vm2172_vm8, %v3364_v54, %v3379_v56 }
 0x366   : > { %2882 = vmatmul.mubr.msk.f32.vlgmr.msra.gmra.mrb[16].mxu1 %vm1234_vm6, %v1664_v27  ;;  %v4620_v60 = vpop.permute.xlu0 %3382  ;;  %v3015_v44 = vpack.c.bf16 %v2180_v34, %v2179_v59  ;;  %v3017_v54 = vpack.c.bf16 %v4633_v9, %v2173_v51 }
 0x367   : > { %2990 = vmatpush1.bf16.msra.mxu0 %v2989_v5  ;;  %2994 = vmatpush1.bf16.msra.mxu1 %v2993_v19  ;;  %v3413_v48 = vpop.permute.xlu1 %3412  ;;  %v3385_v10 = vunpack.i.h.bf16 %v4620_v60  ;;  %v3384_v50 = vunpack.i.l.bf16 %v4620_v60  ;;  %v3404_v5 = vunpack.i.l.bf16 %v4600_v45  ;;  %v1898_v19 = vld [vmem:[#allocation7 + $0x50] sm:$0xff] }
 0x368   : > { %v3415_v7 = vunpack.i.h.bf16 %v3413_v48  ;;  %v3414_v36 = vunpack.i.l.bf16 %v3413_v48  ;;  %2996 = vmatprep.subr.bf16.mxu1 %v2995_v3  ;;  %3004 = vmatprep.subr.bf16.mxu0 %v3003_v35 }
 0x369   : > { %1742 = vmatprep.mubr.f32.mxu1 %v3704_v0  ;;  %v2323_v33 = vsel %vm2316_vm9, %v3394_v62, %v3384_v50  ;;  %v2324_v39 = vsel %vm2316_vm9, %v3395_v17, %v3385_v10  ;;  %v2318_v49 = vsel %vm2316_vm9, %v3385_v10, %v3395_v17  ;;  %v2317_v2 = vsel %vm2316_vm9, %v3384_v50, %v3394_v62 }
 0x36a   : > { %v1889_v11 = vsel %vm1884_vm5, %v3354_v57, %v3414_v36  ;;  %v1890_v15 = vsel %vm1884_vm5, %v3355_v53, %v3415_v7  ;;  %2883 = vmatmul.mubr.msk.f32.gmra.mrb[18].mxu1 %vm1234_vm6, %v1665_v58  ;;  %2885 = vmatmul.mubr.msk.f32.vlgmr.msra.gmra.mrb[20].mxu0 %vm1234_vm6, %v1771_v61  ;;  %v3398_v24 = vpop.permute.xlu0 %3397  ;;  %v1895_v38 = vsel %vm1884_vm5, %v3414_v36, %v3354_v57  ;;  %v1899_v61 = vld [vmem:[#allocation7 + $0x58] sm:$0xff] }
 0x36b   : > { %v3001_v13 = vpack.c.bf16 %v1890_v15, %v1889_v11  ;;  %v3399_v25 = vunpack.i.l.bf16 %v3398_v24  ;;  %2998 = vmatpush1.bf16.msra.mxu1 %v2997_v28  ;;  %3006 = vmatpush1.bf16.msra.mxu0 %v3005_v47  ;;  %v3418_v20 = vpop.permute.xlu1 %3417  ;;  %v3400_v43 = vunpack.i.h.bf16 %v3398_v24  ;;  %v1896_v14 = vsel %vm1884_vm5, %v3415_v7, %v3355_v53  ;;  %v2043_v24 = vld [vmem:[#allocation7 + $0x68] sm:$0xff] }
 0x36c   : > { %v3420_v63 = vunpack.i.h.bf16 %v3418_v20  ;;  %v3419_v41 = vunpack.i.l.bf16 %v3418_v20  ;;  %3008 = vmatprep.subr.bf16.mxu0 %v3007_v4  ;;  %1849 = vmatprep.mubr.f32.mxu0 %v3704_v0  ;;  %v2999_v29 = vpack.c.bf16 %v1896_v14, %v1895_v38  ;;  %v3027_v55 = vpack.c.bf16 %v2324_v39, %v2323_v33  ;;  %v2186_v14 = vld [vmem:[#allocation7 + $0x70] sm:$0xff]  ;;  %v2187_v33 = vld [vmem:[#allocation7 + $0x78] sm:$0xff] }
 0x36d   : > { %1970 = vmatprep.mubr.f32.mxu1 %v3704_v0  ;;  %v2181_v32 = vsel %vm2172_vm8, %v3404_v5, %v3399_v25  ;;  %v2182_v3 = vsel %vm2172_vm8, %v3405_v6, %v3400_v43  ;;  %v2175_v52 = vsel %vm2172_vm8, %v3399_v25, %v3404_v5  ;;  %v1321_v39 = vshrl.u32 %v1217_v18, 7 }
 0x36e   : > { %v2033_v1 = vsel %vm2028_vm7, %v3359_v46, %v3419_v41  ;;  %v2034_v22 = vsel %vm2028_vm7, %v3360_v42, %v3420_v63  ;;  %2886 = vmatmul.mubr.msk.f32.gmra.mrb[22].mxu0 %vm1234_vm6, %v1772_v40  ;;  %v3408_v23 = vpop.permute.xlu0 %3407  ;;  %v2039_v31 = vsel %vm2028_vm7, %v3419_v41, %v3359_v46  ;;  %3000 = vmatprep.subr.bf16.mxu1 %v2999_v29 }
 0x36f   : > { %v3013_v12 = vpack.c.bf16 %v2034_v22, %v2033_v1  ;;  %v3410_v37 = vunpack.i.h.bf16 %v3408_v23  ;;  %v3409_v28 = vunpack.i.l.bf16 %v3408_v23  ;;  %3010 = vmatpush1.bf16.msra.mxu0 %v3009_v16  ;;  %v3423_v45 = vpop.permute.xlu1 %3422  ;;  %v2040_v27 = vsel %vm2028_vm7, %v3420_v63, %v3360_v42  ;;  %3002 = vmatpush1.bf16.msra.mxu1 %v3001_v13  ;;  %v2042_v42 = vld [vmem:[#allocation7 + $0x60] sm:$0xff] }
 0x370   : > { %v3425_v26 = vunpack.i.h.bf16 %v3423_v45  ;;  %v3424_v30 = vunpack.i.l.bf16 %v3423_v45  ;;  %v3011_v47 = vpack.c.bf16 %v2040_v27, %v2039_v31  ;;  %2114 = vmatprep.mubr.f32.mxu0 %v3704_v0  ;;  %v2176_v16 = vsel %vm2172_vm8, %v3400_v43, %v3405_v6  ;;  %3016 = vmatprep.subr.bf16.mxu1 %v3015_v44  ;;  %v2330_v44 = vld [vmem:[#allocation7 + $0x80] sm:$0xff] }
 0x371   : > { %v3019_v57 = vpack.c.bf16 %v2182_v3, %v2181_v32  ;;  %v3029_v46 = vpack.c.bf16 %v2318_v49, %v2317_v2  ;;  %v3021_v17 = vpack.c.bf16 %v2176_v16, %v2175_v52  ;;  %v4731_v22 = vsub.s32 0, %v1321_v39  ;;  %v1318_v31 = vld [vmem:[%s4970_s16] sm:$0x3] }
 0x372   : > { %3012 = vmatprep.subr.bf16.mxu0 %v3011_v47  ;;  %v3428_v35 = vpop.permute.xlu0 %3427  ;;  %v2325_v8 = vsel %vm2316_vm9, %v3424_v30, %v3409_v28  ;;  %v2326_v56 = vsel %vm2316_vm9, %v3425_v26, %v3410_v37  ;;  %2887 = vmatmul.mubr.msk.f32.vlgmr.msra.gmra.mrb[20].mxu1 %vm1234_vm6, %v1898_v19  ;;  %v2319_v62 = vsel %vm2316_vm9, %v3409_v28, %v3424_v30  ;;  %v4736_v32 = vsub.s32 1, %v1321_v39  ;;  %v2881_v30 = vld [vmem:[%s4971_s4 + $0x4] sm:$0x3] }
 0x373   : > { %v3430_v53 = vunpack.i.h.bf16 %v3428_v35  ;;  %v3429_v60 = vunpack.i.l.bf16 %v3428_v35  ;;  %3014 = vmatpush1.bf16.msra.mxu0 %v3013_v12  ;;  %v3438_v4 = vpop.permute.xlu1 %3437  ;;  %3018 = vmatpush1.bf16.msra.mxu1 %v3017_v54  ;;  %v2320_v6 = vsel %vm2316_vm9, %v3410_v37, %v3425_v26  ;;  %v3031_v7 = vpack.c.bf16 %v2326_v56, %v2325_v8  ;;  %v2878_v12 = vld [vmem:[%s4971_s4 + $0x2] sm:$0x3] }
 0x374   : > { %v3440_v48 = vunpack.i.h.bf16 %v3438_v4  ;;  %v3439_v58 = vunpack.i.l.bf16 %v3438_v4  ;;  %3028 = vmatprep.subr.bf16.mxu0 %v3027_v55  ;;  %3020 = vmatprep.subr.bf16.mxu1 %v3019_v57  ;;  %v3033_v20 = vpack.c.bf16 %v2320_v6, %v2319_v62  ;;  %v1323_v28 = vrot.slane %v1318_v31, %v4731_v22 }
 0x375   : > { %1976 = vmatprep.mubr.f32.mxu1 %v3704_v0  ;;  %v1467_v45 = vrot.slane %v2878_v12, %v4731_v22  ;;  %v1327_v27 = vrot.slane %v1318_v31, %v4736_v32  ;;  %v1471_v26 = vrot.slane %v2878_v12, %v4736_v32  ;;  %v1611_v52 = vrot.slane %v2881_v30, %v4731_v22 }
 0x376   : > { %v2177_v36 = vsel %vm2172_vm8, %v3429_v60, %v3439_v58  ;;  %v2178_v9 = vsel %vm2172_vm8, %v3430_v53, %v3440_v48  ;;  %2890 = vmatmul.mubr.msk.f32.vlgmr.msra.gmra.mrb[24].mxu0 %vm1234_vm6, %v2042_v42  ;;  %v3433_v10 = vpop.permute.xlu0 %3432  ;;  %v2183_v50 = vsel %vm2172_vm8, %v3439_v58, %v3429_v60  ;;  %v2184_v59 = vsel %vm2172_vm8, %v3440_v48, %v3430_v53 }
 0x377   : > { %2888 = vmatmul.mubr.msk.f32.gmra.mrb[22].mxu1 %vm1234_vm6, %v1899_v61  ;;  %v3435_v5 = vunpack.i.h.bf16 %v3433_v10  ;;  %v3434_v11 = vunpack.i.l.bf16 %v3433_v10  ;;  %3030 = vmatpush1.bf16.msra.mxu0 %v3029_v46  ;;  %v3443_v15 = vpop.permute.xlu1 %3442  ;;  %v3023_v34 = vpack.c.bf16 %v2184_v59, %v2183_v50  ;;  %v3025_v51 = vpack.c.bf16 %v2178_v9, %v2177_v36  ;;  %v2884_v61 = vld [vmem:[%s4971_s4 + $0x6] sm:$0x3] }
 0x378   : > { %3022 = vmatpush1.bf16.msra.mxu1 %v3021_v17  ;;  %v3445_v13 = vunpack.i.h.bf16 %v3443_v15  ;;  %v3444_v25 = vunpack.i.l.bf16 %v3443_v15  ;;  %3032 = vmatprep.subr.bf16.mxu0 %v3031_v7  ;;  %v1615_v35 = vrot.slane %v2881_v30, %v4736_v32  ;;  %v1755_v50 = vrot.slane %v2884_v61, %v4731_v22 }
 0x379   : > { %2120 = vmatprep.mubr.f32.mxu0 %v3704_v0  ;;  %3024 = vmatprep.subr.bf16.mxu1 %v3023_v34 }
 0x37a   : > { %v2321_v40 = vsel %vm2316_vm9, %v3434_v11, %v3444_v25  ;;  %v2322_v38 = vsel %vm2316_vm9, %v3435_v5, %v3445_v13  ;;  %2891 = vmatmul.mubr.msk.f32.gmra.mrb[26].mxu0 %vm1234_vm6, %v2043_v24  ;;  %2258 = vmatprep.mubr.f32.mxu1 %v3704_v0  ;;  %v2327_v43 = vsel %vm2316_vm9, %v3444_v25, %v3434_v11 }
 0x37b   : > { %v3037_v63 = vpack.c.bf16 %v2322_v38, %v2321_v40  ;;  %3034 = vmatpush1.bf16.msra.mxu0 %v3033_v20  ;;  %v2328_v41 = vsel %vm2316_vm9, %v3445_v13, %v3435_v5  ;;  %2402 = vmatprep.mubr.f32.mxu0 %v3704_v0  ;;  %v1759_v5 = vrot.slane %v2884_v61, %v4736_v32 }
 0x37c   : > { %3026 = vmatpush1.bf16.msra.mxu1 %v3025_v51  ;;  %v3035_v29 = vpack.c.bf16 %v2328_v41, %v2327_v43 }
 0x37e   : > { %3036 = vmatprep.subr.bf16.mxu0 %v3035_v29 }
 0x37f   : > { %2893 = vmatmul.mubr.msk.f32.vlgmr.msra.gmra.mrb[24].mxu1 %vm1234_vm6, %v2186_v14  ;;  %3038 = vmatpush1.bf16.msra.mxu0 %v3037_v63 }
 0x380   : > { %2264 = vmatprep.mubr.f32.mxu1 %v3704_v0 }
 0x382   : > { %2896 = vmatmul.mubr.msk.f32.vlgmr.msra.gmra.mrb[28].mxu0 %vm1234_vm6, %v2330_v44 }
 0x383   : > { %2894 = vmatmul.mubr.msk.f32.gmra.mrb[26].mxu1 %vm1234_vm6, %v2187_v33  ;;  %2408 = vmatprep.mubr.f32.mxu0 %v3704_v0 }
 0x384   : > { %2540 = vmatprep.mubr.f32.mxu1 %v3704_v0 }
 0x386   : > { %2897 = vmatmul.mubr.msk.f32.gmra.mrb[30].mxu0 %vm1234_vm6, %v2331_v21  ;;  %v2889_v21 = vld [vmem:[%s4971_s4 + $0xa] sm:$0x3] }
 0x424   : > { %v1307_v1 = vpop.f32.mrb[12].mxu0 }
 0x425   : > { %v1309_v23 = vpop.f32.mrb[13].mxu0  ;;  %v1330_v47 = vmul.f32 %v1323_v28, %v1307_v1 }
 0x426   : > { %v1331_v2 = vmul.f32 %v1327_v27, %v1309_v23 }
 0x428   : > { %v1313_v37 = vpop.f32.mrb[14].mxu0 }
 0x429   : > { %v1315_v18 = vpop.f32.mrb[15].mxu0  ;;  %v1332_v56 = vmul.f32 %v1323_v28, %v1313_v37  ;;  %v1989_v37 = vrot.slane %v2889_v21, %v4731_v22  ;;  %v2892_v28 = vld [vmem:[%s4971_s4 + $0xc] sm:$0x3] }
 0x42a   : > { %v1333_v57 = vmul.f32 %v1327_v27, %v1315_v18  ;;  %v2133_v27 = vrot.slane %v2892_v28, %v4731_v22 }
 0x42c   : > { %v1450_v19 = vpop.f32.mrb[12].mxu1 }
 0x42d   : > { %v1474_v3 = vmul.f32 %v1467_v45, %v1450_v19  ;;  %v1452_v49 = vpop.f32.mrb[13].mxu1  ;;  %v2137_v19 = vrot.slane %v2892_v28, %v4736_v32 }
 0x42e   : > { %v1475_v16 = vmul.f32 %v1471_v26, %v1452_v49 }
 0x42f   : > { %v1478_v54 = vadd.f32 %v1474_v3, %v1330_v47 }
 0x430   : > { %v1479_v55 = vadd.f32 %v1475_v16, %v1331_v2  ;;  %v1456_v8 = vpop.f32.mrb[14].mxu1 }
 0x431   : > { %v1476_v53 = vmul.f32 %v1467_v45, %v1456_v8  ;;  %v1594_v60 = vpop.f32.mrb[16].mxu0  ;;  %v1458_v4 = vpop.f32.mrb[15].mxu1  ;;  %v1993_v45 = vrot.slane %v2889_v21, %v4736_v32 }
 0x432   : > { %v1618_v42 = vmul.f32 %v1611_v52, %v1594_v60  ;;  %v1477_v46 = vmul.f32 %v1471_v26, %v1458_v4  ;;  %v1596_v17 = vpop.f32.mrb[17].mxu0  ;;  %v2895_v60 = vld [vmem:[%s4971_s4 + $0xe] sm:$0x3]  ;;  %v2441_v21 = vpop.permute.xlu0 %2440 }
 0x433   : > { %v1480_v48 = vadd.f32 %v1476_v53, %v1332_v56  ;;  %v1619_v58 = vmul.f32 %v1615_v35, %v1596_v17  ;;  %v2277_v61 = vrot.slane %v2895_v60, %v4731_v22 }
 0x434   : > { %v1622_v62 = vadd.f32 %v1618_v42, %v1478_v54  ;;  %v1481_v6 = vadd.f32 %v1477_v46, %v1333_v57 }
 0x435   : > { %v1623_v7 = vadd.f32 %v1619_v58, %v1479_v55  ;;  %v1600_v36 = vpop.f32.mrb[18].mxu0 }
 0x436   : > { %v1620_v9 = vmul.f32 %v1611_v52, %v1600_v36  ;;  %v1602_v10 = vpop.f32.mrb[19].mxu0 }
 0x437   : > { %v1621_v59 = vmul.f32 %v1615_v35, %v1602_v10 }
 0x438   : > { %v1624_v11 = vadd.f32 %v1620_v9, %v1480_v48 }
 0x439   : > { %v1625_v15 = vadd.f32 %v1621_v59, %v1481_v6  ;;  %v1738_v24 = vpop.f32.mrb[16].mxu1 }
 0x43a   : > { %v1762_v34 = vmul.f32 %v1755_v50, %v1738_v24  ;;  %v1740_v51 = vpop.f32.mrb[17].mxu1 }
 0x43b   : > { %v1763_v13 = vmul.f32 %v1759_v5, %v1740_v51 }
 0x43c   : > { %v1766_v25 = vadd.f32 %v1762_v34, %v1622_v62  ;;  %v2898_v62 = vld [vmem:[%s4971_s4 + $0x10] sm:$0x3] }
 0x43d   : > { %v1744_v20 = vpop.f32.mrb[18].mxu1  ;;  %v1845_v40 = vpop.f32.mrb[20].mxu0  ;;  %v1767_v38 = vadd.f32 %v1763_v13, %v1623_v7  ;;  %v2281_v7 = vrot.slane %v2895_v60, %v4736_v32  ;;  %v2421_v10 = vrot.slane %v2898_v62, %v4731_v22 }
 0x43e   : > { %v1764_v43 = vmul.f32 %v1755_v50, %v1744_v20  ;;  %v1856_v63 = vadd.f32 %v1845_v40, %v1766_v25  ;;  %v1746_v41 = vpop.f32.mrb[19].mxu1  ;;  %v1847_v14 = vpop.f32.mrb[21].mxu0 }
 0x43f   : > { %v1765_v29 = vmul.f32 %v1759_v5, %v1746_v41  ;;  %v1857_v44 = vadd.f32 %v1847_v14, %v1767_v38  ;;  %v2425_v5 = vrot.slane %v2898_v62, %v4736_v32 }
 0x440   : > { %v1768_v33 = vadd.f32 %v1764_v43, %v1624_v11 }
 0x441   : > { %v1851_v39 = vpop.f32.mrb[22].mxu0  ;;  %v1769_v1 = vadd.f32 %v1765_v29, %v1625_v15 }
 0x442   : > { %v1858_v23 = vadd.f32 %v1851_v39, %v1768_v33  ;;  %v1853_v31 = vpop.f32.mrb[23].mxu0 }
 0x443   : > { %v1859_v12 = vadd.f32 %v1853_v31, %v1769_v1 }
 0x445   : > { %v1972_v18 = vpop.f32.mrb[20].mxu1 }
 0x446   : > { %v1996_v26 = vmul.f32 %v1989_v37, %v1972_v18  ;;  %v1974_v30 = vpop.f32.mrb[21].mxu1 }
 0x447   : > { %v1997_v47 = vmul.f32 %v1993_v45, %v1974_v30 }
 0x448   : > { %v2000_v3 = vadd.f32 %v1996_v26, %v1856_v63 }
 0x449   : > { %v2116_v49 = vpop.f32.mrb[24].mxu0  ;;  %v2001_v2 = vadd.f32 %v1997_v47, %v1857_v44  ;;  %v2456_v47 = vld [vmem:[%s4972_s20] sm:$0xff]  ;;  %s2859_s20 = sshll.u32 %s5009_s22, 2 }
 0x44a   : > { %v1978_v16 = vpop.f32.mrb[22].mxu1  ;;  %v2140_v52 = vmul.f32 %v2133_v27, %v2116_v49  ;;  %v2118_v54 = vpop.f32.mrb[25].mxu0  ;;  %s635_s16 = sadd.s32 %s2860_s19, %s2859_s20 }
 0x44b   : > { %v1998_v35 = vmul.f32 %v1989_v37, %v1978_v16  ;;  %v1980_v55 = vpop.f32.mrb[23].mxu1  ;;  %v2141_v8 = vmul.f32 %v2137_v19, %v2118_v54  ;;  %v2463_v16 = vpop.permute.xlu0 %2462  ;;  %s2861_s24 = sshll.u32 %s635_s16, 3 }
 0x44c   : > { %v2144_v56 = vadd.f32 %v2140_v52, %v2000_v3  ;;  %v1999_v53 = vmul.f32 %v1993_v45, %v1980_v55  ;;  %v2457_v3 = vld [vmem:[%s4973_s28 + $0x8] sm:$0xf]  ;;  %s637_s0 = scalar_lea.vmem %s4976_s1, %s2861_s24 }
 0x44d   : > { %v2002_v4 = vadd.f32 %v1998_v35, %v1858_v23  ;;  %v2145_v57 = vadd.f32 %v2141_v8, %v2001_v2  ;;  %v2122_v42 = vpop.f32.mrb[26].mxu0  ;;  %v2446_v23 = vpop.permute.xlu1 %2445 }
 0x44e   : > { %v2003_v46 = vadd.f32 %v1999_v53, %v1859_v12  ;;  %v2142_v17 = vmul.f32 %v2133_v27, %v2122_v42  ;;  %v2124_v48 = vpop.f32.mrb[27].mxu0 }
 0x44f   : > { %v2143_v58 = vmul.f32 %v2137_v19, %v2124_v48  ;;  %v2557_v48 = vld [vmem:[%s4975_s2] sm:$0xff] }
 0x450   : > { %v2146_v6 = vadd.f32 %v2142_v17, %v2002_v4 }
 0x451   : > { %v2147_v36 = vadd.f32 %v2143_v58, %v2003_v46  ;;  %v2468_v54 = vpop.permute.xlu1 %2467  ;;  %v2558_v58 = vld [vmem:[%s4975_s2 + $0x8] sm:$0xf] }
 0x452   : > { %v2260_v9 = vpop.f32.mrb[24].mxu1 }
 0x453   : > { %v2284_v50 = vmul.f32 %v2277_v61, %v2260_v9  ;;  %v2262_v59 = vpop.f32.mrb[25].mxu1 }
 0x454   : > { %v2285_v11 = vmul.f32 %v2281_v7, %v2262_v59  ;;  %v3446_v59 = vld [vmem:[%s4147_s23] sm:$0xff] }
 0x455   : > { %v2288_v15 = vadd.f32 %v2284_v50, %v2144_v56  ;;  %v2404_v24 = vpop.f32.mrb[28].mxu0  ;;  %v2569_v9 = vpop.permute.xlu1 %2568 }
 0x456   : > { %v2289_v34 = vadd.f32 %v2285_v11, %v2145_v57  ;;  %v2266_v51 = vpop.f32.mrb[26].mxu1  ;;  %v2428_v13 = vmul.f32 %v2421_v10, %v2404_v24  ;;  %v2406_v25 = vpop.f32.mrb[29].mxu0  ;;  %v3447_v24 = vld [vmem:[%s4147_s23 + $0x8] sm:$0xff] }
 0x457   : > { %v2286_v20 = vmul.f32 %v2277_v61, %v2266_v51  ;;  %v2268_v40 = vpop.f32.mrb[27].mxu1  ;;  %v2429_v38 = vmul.f32 %v2425_v5, %v2406_v25  ;;  %v2564_v61 = vpop.permute.xlu0 %2563 }
 0x458   : > { %v2432_v43 = vadd.f32 %v2428_v13, %v2288_v15  ;;  %v2287_v63 = vmul.f32 %v2281_v7, %v2268_v40 }
 0x459   : > { %v2290_v41 = vadd.f32 %v2286_v20, %v2146_v6  ;;  %v2433_v14 = vadd.f32 %v2429_v38, %v2289_v34  ;;  %v2410_v29 = vpop.f32.mrb[30].mxu0  ;;  %v3448_v20 = vld [vmem:[%s4147_s23 + $0x10] sm:$0xff]  ;;  %v3449_v38 = vld [vmem:[%s4147_s23 + $0x18] sm:$0xff] }
 0x45a   : > { %v2291_v22 = vadd.f32 %v2287_v63, %v2147_v36  ;;  %v2430_v44 = vmul.f32 %v2421_v10, %v2410_v29  ;;  %v2412_v33 = vpop.f32.mrb[31].mxu0  ;;  %v2448_v39 = vadd.f32 %v2441_v21, %v2432_v43 }
 0x45b   : > { %v2431_v32 = vmul.f32 %v2425_v5, %v2412_v33  ;;  %v2449_v31 = vadd.f32 %v2441_v21, %v2433_v14 }
 0x45c   : > { %v2434_v1 = vadd.f32 %v2430_v44, %v2290_v41  ;;  %v2452_v45 = vmax.f32 %v2448_v39, 0.0 }
 0x45d   : > { %v2435_v12 = vadd.f32 %v2431_v32, %v2291_v22  ;;  %v2453_v27 = vmax.f32 %v2449_v31, 0.0 }
 0x45e   : > { %v2450_v37 = vadd.f32 %v2446_v23, %v2434_v1 }
 0x45f   : > { %v2451_v28 = vadd.f32 %v2446_v23, %v2435_v12 }
 0x460   : > { %v2454_v18 = vmax.f32 %v2450_v37, 0.0 }
 0x461   : > { %v2455_v26 = vmax.f32 %v2451_v28, 0.0 }
 0x462   : > { %v3041_v30 = vpack.c.bf16 %v2454_v18, %v2452_v45 }
 0x463   : > { %v3039_v19 = vpack.c.bf16 %v2455_v26, %v2453_v27 }
 0x465   : > { %3040 = vmatprep.subr.bf16.mxu1 %v3039_v19 }
 0x466   : > { %3042 = vmatpush1.bf16.msra.mxu1 %v3041_v30 }
 0x469   : > { %2899 = vmatmul.mubr.msk.f32.vlgmr.msra.gmra.mrb[28].mxu1 %vm664_vm0, %v2456_v47 }
 0x46a   : > { %2546 = vmatprep.mubr.f32.mxu1 %v3704_v0 }
 0x46d   : > { %2900 = vmatmul.mubr.msk.f32.gmra.mrb[30].mxu1 %vm664_vm0, %v2457_v3 }
 0x46e   : > { %2649 = vmatprep.mubr.f32.mxu1 %v3704_v0 }
 0x53c   : > { %v2542_v49 = vpop.f32.mrb[28].mxu1 }
 0x53d   : > { %v2544_v2 = vpop.f32.mrb[29].mxu1  ;;  %v2543_v52 = vadd.f32 %v2542_v49, %v2463_v16 }
 0x53e   : > { %v2545_v35 = vadd.f32 %v2544_v2, %v2463_v16 }
 0x53f   : > { %v2553_v60 = vmax.f32 %v2543_v52, 0.0 }
 0x540   : > { %v2548_v55 = vpop.f32.mrb[30].mxu1  ;;  %v2554_v57 = vmax.f32 %v2545_v35, 0.0 }
 0x541   : > { %v2549_v8 = vadd.f32 %v2548_v55, %v2468_v54  ;;  %v2550_v56 = vpop.f32.mrb[31].mxu1 }
 0x542   : > { %v2551_v53 = vadd.f32 %v2550_v56, %v2468_v54 }
 0x543   : > { %v2555_v4 = vmax.f32 %v2549_v8, 0.0 }
 0x544   : > { %v2556_v42 = vmax.f32 %v2551_v53, 0.0 }
 0x545   : > { %v3046_v46 = vpack.c.bf16 %v2555_v4, %v2553_v60 }
 0x546   : > { %v3043_v17 = vpack.c.bf16 %v2556_v42, %v2554_v57 }
 0x548   : > { %3045 = vmatprep.subr.msk.bf16.mxu1 %vm3044_vm12, %v3043_v17 }
 0x549   : > { %3048 = vmatpush1.bf16.msk.msra.mxu1 %vm3044_vm12, %v3046_v46 }
 0x54c   : > { %2903 = vmatmul.mubr.msk.f32.vlgmr.msra.gmra.mrb[32].mxu1 %vm2571_vm13, %v2557_v48 }
 0x54d   : > { %2655 = vmatprep.mubr.f32.mxu1 %v3704_v0 }
 0x550   : > { %2904 = vmatmul.mubr.msk.f32.gmra.mrb[34].mxu1 %vm2571_vm13, %v2558_v58 }
 0x61f   : > { %v2651_v62 = vpop.f32.mrb[32].mxu1 }
 0x620   : > { %v2652_v6 = vadd.f32 %v2651_v62, %v2564_v61  ;;  %v2653_v7 = vpop.f32.mrb[33].mxu1 }
 0x621   : > { %v2654_v0 = vadd.f32 %v2653_v7, %v2564_v61 }
 0x622   : > { %v2662_v36 = vmax.f32 %v2652_v6, 0.0 }
 0x623   : > { %v2663_v10 = vmax.f32 %v2654_v0, 0.0  ;;  %v2657_v50 = vpop.f32.mrb[34].mxu1 }
 0x624   : > { %v2666_v5 = vadd.f32 %v3446_v59, %v2662_v36  ;;  %v2658_v11 = vadd.f32 %v2657_v50, %v2569_v9  ;;  %v2659_v15 = vpop.f32.mrb[35].mxu1 }
 0x625   : > { %v2667_v34 = vadd.f32 %v3447_v24, %v2663_v10  ;;  %v2660_v51 = vadd.f32 %v2659_v15, %v2569_v9 }
 0x626   : > { %2670 = vst [vmem:[%s637_s0] sm:$0xff] %v2666_v5  ;;  %v2664_v13 = vmax.f32 %v2658_v11, 0.0 }
 0x627   : > { %2671 = vst [vmem:[%s637_s0 + $0x8] sm:$0xff] %v2667_v34  ;;  %v2665_v25 = vmax.f32 %v2660_v51, 0.0 }
 0x628   : > { %v2668_v40 = vadd.f32 %v3448_v20, %v2664_v13 }
 0x629   : > { %v2669_v43 = vadd.f32 %v3449_v38, %v2665_v25 }
 0x62a   : > { %2672 = vst [vmem:[%s637_s0 + $0x10] sm:$0xf] %v2668_v40 }
 0x62b   : > { %2673 = vst [vmem:[%s637_s0 + $0x18] sm:$0xf] %v2669_v43 }
 0x62c PF: > { %s31_s26 = sadd.s32 1, %s3694_s26   ;;  %s4978_s16 = sld [smem:[#allocation13_spill]] }
 0x62d   : > { %p4805_p5 = scmp.ge.s32.totalorder %s31_s26, 10   ;;  %s4979_s27 = smov %s4024_s17 }
 0x62e   : > { %s4980_s19 = sld [smem:[#allocation14_spill]]  ;;  %s4981_s23 = sld [smem:[#allocation17_spill]] }
 0x62f   : > { %s4982_s24 = sld [smem:[#allocation18_spill]]  ;;  %s4983_s0 = sld [smem:[#allocation22_spill]] }
 0x630   : > { %s4985_s29 = smov %s3646_s30  ;;  %s4986_s30 = smov %s3650_s15 }
 0x631   : > { %s4987_s15 = smov %s4092_s6  ;;  %s4988_s17 = smov %s3662_s18 }
 0x632   : > { %s4989_s18 = smov %s4979_s27  ;;  %s4990_s20 = smov %s3674_s21 }
 0x633   : > { %s4991_s21 = smov %s4019_s25  ;;  %30 = sbr.rel (!%p4805_p5) target bundleno = 27 (0x1b), region = 159 }
 0x634   : > { %s4992_s22 = smov %s4981_s23 }
 0x635   : > { %s4993_s23 = smov %s4982_s24  ;;  %s4994_s24 = smov %s3870_s11 }
 0x636   : > { %s4995_s25 = smov %s4983_s0 }
 0x63a   :  { %2703 = vsyncpa [#allocation3], 1 }
 0x63b   :  { %2705 = vsyncpa [#allocation3 + $0x1], 1 }
 0x63c   :  { %2706 = vsyncpa [#allocation5], 1 }
 0x63d   :  { %2708 = vsyncpa [#allocation5 + $0x1], 1 }
 0x63e   :  { %2709 = vsyncpa [#allocation8], 1 }

</bundles_post_ra>
